<compile_context>
chip_gen: v6e
topology: v6e:2x2x1
jax: 0.10.0
libtpu: 0.0.40
codegen_flags: <defaults>
</compile_context>

<pallas_src>
import functools

import jax
import jax.numpy as jnp
from jax.experimental import pallas as pl
from jax.experimental.pallas import tpu as pltpu

HIDDEN = 128


def _fused_gcn_kernel(x_ref, a_ref, w1_ref, b1_ref, ws_ref, bs_ref, o_ref):
    """Fused 4-layer GCN forward.

    x_ref : (N, F_in)  bf16     a_ref : (N, N)      bf16
    w1_ref: (F_in,128) bf16     b1_ref: (1, 128)    f32
    ws_ref: (3,128,128) bf16    bs_ref: (3, 1, 128) f32   (conv2, conv3, conv4-padded)
    o_ref : (N, 128)    f32     (lane-dense padded class logits)
    """

    def gcn_layer(h_bf16, w_bf16, b_f32, apply_relu):
        # support = H @ W  (bf16 x bf16 -> f32 accumulate on the MXU)
        s = jnp.dot(h_bf16, w_bf16, preferred_element_type=jnp.float32)
        # aggregate: A @ support + b   (A read straight from VMEM each time)
        out = jnp.dot(a_ref[...], s.astype(jnp.bfloat16),
                      preferred_element_type=jnp.float32) + b_f32
        # ReLU in f32 (v5e VPU has no bf16 ALU); narrow only at next matmul LHS.
        return jnp.maximum(out, 0.0) if apply_relu else out

    h = gcn_layer(x_ref[...], w1_ref[...], b1_ref[...], True)
    h = gcn_layer(h.astype(jnp.bfloat16), ws_ref[0], bs_ref[0], True)
    h = gcn_layer(h.astype(jnp.bfloat16), ws_ref[1], bs_ref[1], True)
    h = gcn_layer(h.astype(jnp.bfloat16), ws_ref[2], bs_ref[2], False)
    o_ref[...] = h.astype(o_ref.dtype)


def prepare_gcn_params(params):
    """One-time parameter packing (hoisted out of the per-call path).

    params: 4 tuples of (W, b) for conv1..conv4.
    Returns (packed_arrays_dict, class_n).
    """
    (w1, b1), (w2, b2), (w3, b3), (w4, b4) = params
    class_n = w4.shape[1]
    assert w2.shape == (HIDDEN, HIDDEN) and w3.shape == (HIDDEN, HIDDEN)
    assert class_n <= HIDDEN, "stacked-weight packing assumes class_n <= 128"

    # Zero-pad conv4 to a lane-dense 128-wide output (unmasked vst, full MXU
    # columns).  Padding columns stay exactly zero (no ReLU on the last layer).
    w4p = jnp.zeros((HIDDEN, HIDDEN), jnp.float32).at[:, :class_n].set(
        w4.astype(jnp.float32))
    b4p = jnp.zeros((HIDDEN,), jnp.float32).at[:class_n].set(
        b4.astype(jnp.float32))

    packed = {
        "w1": w1.astype(jnp.bfloat16),                                   # (F_in,128)
        "b1": b1.reshape(1, HIDDEN).astype(jnp.float32),                 # (1,128)
        "w_stack": jnp.stack([w2, w3, w4p]).astype(jnp.bfloat16),        # (3,128,128)
        "b_stack": jnp.stack([b2.reshape(1, HIDDEN),
                              b3.reshape(1, HIDDEN),
                              b4p.reshape(1, HIDDEN)]).astype(jnp.float32),  # (3,1,128)
    }
    return packed, class_n


def gcn_citeseer_forward(x, adj, packed, class_n):
    """Method_GCN_Citeseer.forward with train=False (dropout is identity).

    x:(N,F_in) adj:(N,N), packed from prepare_gcn_params.  Returns (N, class_n) f32.
    """
    n, f_in = x.shape

    x_bf = x.astype(jnp.bfloat16)
    a_bf = adj.astype(jnp.bfloat16)
    operands = (x_bf, a_bf, packed["w1"], packed["b1"],
                packed["w_stack"], packed["b_stack"])

    # Advisory cost estimate so XLA schedules/overlaps this call sensibly.
    flops = (2 * n * f_in * HIDDEN + 2 * n * n * HIDDEN          # layer 1
             + 3 * (2 * n * HIDDEN * HIDDEN + 2 * n * n * HIDDEN))  # layers 2-4
    bytes_accessed = sum(int(op.size) * op.dtype.itemsize for op in operands) \
        + n * HIDDEN * 4
    cost = pl.CostEstimate(flops=flops, transcendentals=0,
                           bytes_accessed=bytes_accessed)

    vmem = pl.BlockSpec(memory_space=pltpu.MemorySpace.VMEM)

    out_padded = pl.pallas_call(
        _fused_gcn_kernel,
        out_shape=jax.ShapeDtypeStruct((n, HIDDEN), jnp.float32),
        in_specs=[vmem] * 6,
        out_specs=vmem,
        compiler_params=pltpu.CompilerParams(
            vmem_limit_bytes=32 * 1024 * 1024,
        ),
        cost_estimate=cost,
    )(*operands)

    # TODO(synk): a consumer that can take the padded (N,128) logits directly
    # could skip this slice-copy entirely.
    return out_padded[:, :class_n]


def init_gcn_params(key, in_features, out_features):
    """Matches GraphConvolution.reset_parameters: uniform(-stdv, stdv),
    stdv = 1/sqrt(out_features)."""
    stdv = 1.0 / jnp.sqrt(jnp.float32(out_features))
    kw, kb = jax.random.split(key)
    w = jax.random.uniform(kw, (in_features, out_features), jnp.float32, -stdv, stdv)
    b = jax.random.uniform(kb, (out_features,), jnp.float32, -stdv, stdv)
    return w, b


if __name__ == "__main__":
    # Small synthetic graph consistent with the module's shapes:
    #   N nodes, features_n input features, hidden = 128 (fixed in the module),
    #   class_n output classes (Citeseer has 6).
    N = 256
    FEATURES_N = 128
    CLASS_N = 6

    key = jax.random.PRNGKey(0)
    kx, ka, k1, k2, k3, k4 = jax.random.split(key, 6)

    # Node features.
    x = jax.random.normal(kx, (N, FEATURES_N), jnp.float32)

    # Synthetic symmetric normalized adjacency A_hat = D^-1/2 (A + I) D^-1/2.
    raw = jax.random.uniform(ka, (N, N), jnp.float32)
    a_bin = (raw < 0.02).astype(jnp.float32)
    a_sym = jnp.maximum(a_bin, a_bin.T) + jnp.eye(N, dtype=jnp.float32)
    deg = jnp.sum(a_sym, axis=1)
    d_inv_sqrt = 1.0 / jnp.sqrt(deg)
    adj = a_sym * d_inv_sqrt[:, None] * d_inv_sqrt[None, :]

    # Parameters for conv1..conv4, packed once.
    params = (
        init_gcn_params(k1, FEATURES_N, HIDDEN),
        init_gcn_params(k2, HIDDEN, HIDDEN),
        init_gcn_params(k3, HIDDEN, HIDDEN),
        init_gcn_params(k4, HIDDEN, CLASS_N),
    )
    packed, class_n = prepare_gcn_params(params)

    fwd = jax.jit(functools.partial(gcn_citeseer_forward, class_n=class_n))
    out = fwd(x, adj, packed)
    out = jax.block_until_ready(out)

    # Reference check in plain JAX, full f32 (original module semantics).
    def ref_layer(h, w, b, relu):
        o = adj @ (h @ w) + b
        return jnp.maximum(o, 0.0) if relu else o

    ref = x
    for idx, (w, b) in enumerate(params):
        ref = ref_layer(ref, w, b, relu=(idx < 3))

    assert out.shape == (N, CLASS_N)
    # bf16 matmul operands with f32 accumulation: relaxed tolerance vs f32 ref.
    assert jnp.allclose(out, ref, atol=2e-2, rtol=2e-2)

    print("KERNEL_OK")
</pallas_src>

<mosaic_0001>
module attributes {stable_mosaic.version = 11 : i64} {
  func.func @_fused_gcn_kernel(%arg0: memref<256x128xbf16, #tpu.memory_space<vmem>>, %arg1: memref<256x256xbf16, #tpu.memory_space<vmem>>, %arg2: memref<128x128xbf16, #tpu.memory_space<vmem>>, %arg3: memref<1x128xf32, #tpu.memory_space<vmem>>, %arg4: memref<3x128x128xbf16, #tpu.memory_space<vmem>>, %arg5: memref<3x1x128xf32, #tpu.memory_space<vmem>>, %arg6: memref<256x128xf32, #tpu.memory_space<vmem>>) attributes {dimension_semantics = [], scalar_prefetch = 0 : i64, scratch_operands = 0 : i64, tpu.core_type = #tpu.core_type<tc>} {
    %c0 = arith.constant 0 : index
    %c0_0 = arith.constant 0 : index
    %0 = vector.load %arg0[%c0, %c0_0] : memref<256x128xbf16, #tpu.memory_space<vmem>>, vector<256x128xbf16>
    %c0_1 = arith.constant 0 : index
    %c0_2 = arith.constant 0 : index
    %1 = vector.load %arg2[%c0_1, %c0_2] : memref<128x128xbf16, #tpu.memory_space<vmem>>, vector<128x128xbf16>
    %c0_3 = arith.constant 0 : index
    %c0_4 = arith.constant 0 : index
    %2 = vector.load %arg3[%c0_3, %c0_4] : memref<1x128xf32, #tpu.memory_space<vmem>>, vector<1x128xf32>
    %cst = arith.constant dense<0.000000e+00> : vector<256x128xf32>
    %3 = tpu.matmul %0, %1, %cst {dimension_numbers = #tpu.dot_dimension_numbers<[1], [0], [0], [1], [0, 0, 1, 1], [], []>} : vector<256x128xbf16>, vector<128x128xbf16>, vector<256x128xf32> -> vector<256x128xf32>
    %c0_5 = arith.constant 0 : index
    %c0_6 = arith.constant 0 : index
    %4 = vector.load %arg1[%c0_5, %c0_6] : memref<256x256xbf16, #tpu.memory_space<vmem>>, vector<256x256xbf16>
    %5 = arith.truncf %3 : vector<256x128xf32> to vector<256x128xbf16>
    %cst_7 = arith.constant dense<0.000000e+00> : vector<256x128xf32>
    %6 = tpu.matmul %4, %5, %cst_7 {dimension_numbers = #tpu.dot_dimension_numbers<[1], [0], [0], [1], [0, 0, 1, 1], [], []>} : vector<256x256xbf16>, vector<256x128xbf16>, vector<256x128xf32> -> vector<256x128xf32>
    %7 = vector.broadcast %2 : vector<1x128xf32> to vector<256x128xf32>
    %8 = arith.addf %6, %7 : vector<256x128xf32>
    %cst_8 = arith.constant 0.000000e+00 : f32
    %9 = vector.broadcast %cst_8 : f32 to vector<256x128xf32>
    %10 = arith.maximumf %8, %9 : vector<256x128xf32>
    %11 = arith.truncf %10 : vector<256x128xf32> to vector<256x128xbf16>
    %c0_9 = arith.constant 0 : index
    %c0_10 = arith.constant 0 : index
    %c0_11 = arith.constant 0 : index
    %12 = vector.load %arg4[%c0_9, %c0_10, %c0_11] : memref<3x128x128xbf16, #tpu.memory_space<vmem>>, vector<1x128x128xbf16>
    %13 = vector.shape_cast %12 : vector<1x128x128xbf16> to vector<128x128xbf16>
    %c0_12 = arith.constant 0 : index
    %c0_13 = arith.constant 0 : index
    %c0_14 = arith.constant 0 : index
    %14 = vector.load %arg5[%c0_12, %c0_13, %c0_14] : memref<3x1x128xf32, #tpu.memory_space<vmem>>, vector<1x1x128xf32>
    %15 = vector.shape_cast %14 : vector<1x1x128xf32> to vector<1x128xf32>
    %cst_15 = arith.constant dense<0.000000e+00> : vector<256x128xf32>
    %16 = tpu.matmul %11, %13, %cst_15 {dimension_numbers = #tpu.dot_dimension_numbers<[1], [0], [0], [1], [0, 0, 1, 1], [], []>} : vector<256x128xbf16>, vector<128x128xbf16>, vector<256x128xf32> -> vector<256x128xf32>
    %c0_16 = arith.constant 0 : index
    %c0_17 = arith.constant 0 : index
    %17 = vector.load %arg1[%c0_16, %c0_17] : memref<256x256xbf16, #tpu.memory_space<vmem>>, vector<256x256xbf16>
    %18 = arith.truncf %16 : vector<256x128xf32> to vector<256x128xbf16>
    %cst_18 = arith.constant dense<0.000000e+00> : vector<256x128xf32>
    %19 = tpu.matmul %17, %18, %cst_18 {dimension_numbers = #tpu.dot_dimension_numbers<[1], [0], [0], [1], [0, 0, 1, 1], [], []>} : vector<256x256xbf16>, vector<256x128xbf16>, vector<256x128xf32> -> vector<256x128xf32>
    %20 = vector.broadcast %15 : vector<1x128xf32> to vector<256x128xf32>
    %21 = arith.addf %19, %20 : vector<256x128xf32>
    %cst_19 = arith.constant 0.000000e+00 : f32
    %22 = vector.broadcast %cst_19 : f32 to vector<256x128xf32>
    %23 = arith.maximumf %21, %22 : vector<256x128xf32>
    %24 = arith.truncf %23 : vector<256x128xf32> to vector<256x128xbf16>
    %c1 = arith.constant 1 : index
    %c0_20 = arith.constant 0 : index
    %c0_21 = arith.constant 0 : index
    %25 = vector.load %arg4[%c1, %c0_20, %c0_21] : memref<3x128x128xbf16, #tpu.memory_space<vmem>>, vector<1x128x128xbf16>
    %26 = vector.shape_cast %25 : vector<1x128x128xbf16> to vector<128x128xbf16>
    %c1_22 = arith.constant 1 : index
    %c0_23 = arith.constant 0 : index
    %c0_24 = arith.constant 0 : index
    %27 = vector.load %arg5[%c1_22, %c0_23, %c0_24] : memref<3x1x128xf32, #tpu.memory_space<vmem>>, vector<1x1x128xf32>
    %28 = vector.shape_cast %27 : vector<1x1x128xf32> to vector<1x128xf32>
    %cst_25 = arith.constant dense<0.000000e+00> : vector<256x128xf32>
    %29 = tpu.matmul %24, %26, %cst_25 {dimension_numbers = #tpu.dot_dimension_numbers<[1], [0], [0], [1], [0, 0, 1, 1], [], []>} : vector<256x128xbf16>, vector<128x128xbf16>, vector<256x128xf32> -> vector<256x128xf32>
    %c0_26 = arith.constant 0 : index
    %c0_27 = arith.constant 0 : index
    %30 = vector.load %arg1[%c0_26, %c0_27] : memref<256x256xbf16, #tpu.memory_space<vmem>>, vector<256x256xbf16>
    %31 = arith.truncf %29 : vector<256x128xf32> to vector<256x128xbf16>
    %cst_28 = arith.constant dense<0.000000e+00> : vector<256x128xf32>
    %32 = tpu.matmul %30, %31, %cst_28 {dimension_numbers = #tpu.dot_dimension_numbers<[1], [0], [0], [1], [0, 0, 1, 1], [], []>} : vector<256x256xbf16>, vector<256x128xbf16>, vector<256x128xf32> -> vector<256x128xf32>
    %33 = vector.broadcast %28 : vector<1x128xf32> to vector<256x128xf32>
    %34 = arith.addf %32, %33 : vector<256x128xf32>
    %cst_29 = arith.constant 0.000000e+00 : f32
    %35 = vector.broadcast %cst_29 : f32 to vector<256x128xf32>
    %36 = arith.maximumf %34, %35 : vector<256x128xf32>
    %37 = arith.truncf %36 : vector<256x128xf32> to vector<256x128xbf16>
    %c2 = arith.constant 2 : index
    %c0_30 = arith.constant 0 : index
    %c0_31 = arith.constant 0 : index
    %38 = vector.load %arg4[%c2, %c0_30, %c0_31] : memref<3x128x128xbf16, #tpu.memory_space<vmem>>, vector<1x128x128xbf16>
    %39 = vector.shape_cast %38 : vector<1x128x128xbf16> to vector<128x128xbf16>
    %c2_32 = arith.constant 2 : index
    %c0_33 = arith.constant 0 : index
    %c0_34 = arith.constant 0 : index
    %40 = vector.load %arg5[%c2_32, %c0_33, %c0_34] : memref<3x1x128xf32, #tpu.memory_space<vmem>>, vector<1x1x128xf32>
    %41 = vector.shape_cast %40 : vector<1x1x128xf32> to vector<1x128xf32>
    %cst_35 = arith.constant dense<0.000000e+00> : vector<256x128xf32>
    %42 = tpu.matmul %37, %39, %cst_35 {dimension_numbers = #tpu.dot_dimension_numbers<[1], [0], [0], [1], [0, 0, 1, 1], [], []>} : vector<256x128xbf16>, vector<128x128xbf16>, vector<256x128xf32> -> vector<256x128xf32>
    %c0_36 = arith.constant 0 : index
    %c0_37 = arith.constant 0 : index
    %43 = vector.load %arg1[%c0_36, %c0_37] : memref<256x256xbf16, #tpu.memory_space<vmem>>, vector<256x256xbf16>
    %44 = arith.truncf %42 : vector<256x128xf32> to vector<256x128xbf16>
    %cst_38 = arith.constant dense<0.000000e+00> : vector<256x128xf32>
    %45 = tpu.matmul %43, %44, %cst_38 {dimension_numbers = #tpu.dot_dimension_numbers<[1], [0], [0], [1], [0, 0, 1, 1], [], []>} : vector<256x256xbf16>, vector<256x128xbf16>, vector<256x128xf32> -> vector<256x128xf32>
    %46 = vector.broadcast %41 : vector<1x128xf32> to vector<256x128xf32>
    %47 = arith.addf %45, %46 : vector<256x128xf32>
    %c0_39 = arith.constant 0 : index
    %c0_40 = arith.constant 0 : index
    %48 = vector.load %arg6[%c0_39, %c0_40] : memref<256x128xf32, #tpu.memory_space<vmem>>, vector<256x128xf32>
    tpu.vector_store %arg6[%c0_39, %c0_40], %47 {strides = array<i32>} : memref<256x128xf32, #tpu.memory_space<vmem>>, vector<256x128xf32>,
    return
  }
}

</mosaic_0001>

<bundles_post_ra>
// kernel: gcn_citeseer_forward.1
= control target key start
LH: loop header
LB: loop body
LE: loop exit
PB: predicated region body
PF: predicated region fallthrough
CT: control target
= control target key end

     0   :  { %s4041_s2 = inlined_call_operand.vmem [shape: bf16[128,128], index: 2, kind: input, shape index: {}]   ;;  %s4042_s0 = inlined_call_operand.vmem [shape: bf16[256,128], index: 0, kind: input, shape index: {}]   ;;  %s4043_s1 = inlined_call_operand.vmem [shape: bf16[256,256], index: 1, kind: input, shape index: {}]   ;;  %s4044_s4 = inlined_call_operand.vmem [shape: bf16[3,128,128], index: 4, kind: input, shape index: {}]   ;;  %s4045_s3 = inlined_call_operand.vmem [shape: f32[1,128], index: 3, kind: input, shape index: {}]   ;;  %s4046_s5 = inlined_call_operand.vmem [shape: f32[3,1,128], index: 5, kind: input, shape index: {}]   ;;  %s4047_s6 = inlined_call_operand.vmem [shape: f32[256,128], index: 6, kind: output, shape index: {}]  }
   0x1   :  { %v3018_v0 = vld [vmem:[%s4041_s2 + $0x38] sm:$0xff]   ;;  %v3019_v1 = vld [vmem:[%s4041_s2 + $0x30] sm:$0xff]   ;;  %v3020_v2 = vld [vmem:[%s4041_s2 + $0x28] sm:$0xff]  }
   0x2   :  { %2826 = vmatprep.subr.bf16.mxu1 %v3018_v0  ;;  %v3021_v3 = vld [vmem:[%s4041_s2 + $0x20] sm:$0xff]   ;;  %v3022_v5 = vld [vmem:[%s4041_s2 + $0x18] sm:$0xff]   ;;  %v3023_v6 = vld [vmem:[%s4041_s2 + $0x10] sm:$0xff]  }
   0x3   :  { %2827 = vmatpush3.bf16.msra.mxu1 %v3018_v0  ;;  %v3026_v4 = vld [vmem:[%s4042_s0] sm:$0xff]   ;;  %v3024_v7 = vld [vmem:[%s4041_s2 + $0x8] sm:$0xff]   ;;  %v3028_v10 = vld [vmem:[%s4042_s0 + $0x10] sm:$0xff]  }
   0x4   :  { %2828 = vmatprep.subr.bf16.mxu1 %v3019_v1  ;;  %2842 = vmatprep.mubr.bf16.mxu1 %v3026_v4  ;;  %v3025_v8 = vld [vmem:[%s4041_s2] sm:$0xff]   ;;  %v3027_v9 = vld [vmem:[%s4042_s0 + $0x8] sm:$0xff]   ;;  %v3029_v11 = vld [vmem:[%s4042_s0 + $0x18] sm:$0xff]  }
   0x5   :  { %v3030_v12 = vld [vmem:[%s4042_s0 + $0x20] sm:$0xff]   ;;  %v3031_v13 = vld [vmem:[%s4042_s0 + $0x28] sm:$0xff]   ;;  %v3032_v14 = vld [vmem:[%s4042_s0 + $0x30] sm:$0xff]  }
   0x6   :  { %v3033_v15 = vld [vmem:[%s4042_s0 + $0x38] sm:$0xff]   ;;  %v3034_v16 = vld [vmem:[%s4042_s0 + $0x40] sm:$0xff]   ;;  %v3035_v17 = vld [vmem:[%s4042_s0 + $0x48] sm:$0xff]  }
   0x7   :  { %2829 = vmatpush3.bf16.msra.mxu1 %v3019_v1  ;;  %v3036_v18 = vld [vmem:[%s4042_s0 + $0x50] sm:$0xff]   ;;  %v3037_v19 = vld [vmem:[%s4042_s0 + $0x58] sm:$0xff]   ;;  %v3038_v20 = vld [vmem:[%s4042_s0 + $0x60] sm:$0xff]  }
   0x8   :  { %2830 = vmatprep.subr.bf16.mxu1 %v3020_v2  ;;  %v3039_v21 = vld [vmem:[%s4042_s0 + $0x68] sm:$0xff]   ;;  %v3040_v22 = vld [vmem:[%s4042_s0 + $0x70] sm:$0xff]   ;;  %v3041_v23 = vld [vmem:[%s4042_s0 + $0x78] sm:$0xff]  }
   0x9   :  { %v3256_v24 = vld [vmem:[%s4043_s1 + $0x4] ss:$8 sps:$4 sm:$0xff]  }
   0xb   :  { %2831 = vmatpush3.bf16.msra.mxu1 %v3020_v2 }
   0xc   :  { %2832 = vmatprep.subr.bf16.mxu1 %v3021_v3 }
   0xf   :  { %2833 = vmatpush3.bf16.msra.mxu1 %v3021_v3 }
  0x10   :  { %2834 = vmatprep.subr.bf16.mxu1 %v3022_v5 }
  0x13   :  { %2835 = vmatpush3.bf16.msra.mxu1 %v3022_v5 }
  0x14   :  { %2836 = vmatprep.subr.bf16.mxu1 %v3023_v6 }
  0x17   :  { %2837 = vmatpush3.bf16.msra.mxu1 %v3023_v6 }
  0x18   :  { %2838 = vmatprep.subr.bf16.mxu1 %v3024_v7 }
  0x1b   :  { %2839 = vmatpush3.bf16.msra.mxu1 %v3024_v7 }
  0x1c   :  { %2840 = vmatprep.subr.bf16.mxu1 %v3025_v8 }
  0x1f   :  { %2841 = vmatpush3.bf16.msra.mxu1 %v3025_v8  ;;  %v3090_v8 = vld [vmem:[%s4044_s4 + $0x38] sm:$0xff]  }
  0x20   :  { %2874 = vmatprep.subr.bf16.mxu0 %v3090_v8 }
  0x21   :  { %2875 = vmatpush3.bf16.msra.mxu0 %v3090_v8 }
  0x22   :  { %2843 = vmatmul.mubr.bf16.vlgmr.msra.gmra.mxu1 %v3027_v9  ;;  %v3269_v9 = vld [vmem:[%s4043_s1] ss:$8 sps:$4 sm:$0xff]  }
  0x23   :  { %2846 = vmatprep.mubr.bf16.mxu1 %v3028_v10  ;;  %v3091_v10 = vld [vmem:[%s4044_s4 + $0x30] sm:$0xff]  }
  0x24   :  { %2876 = vmatprep.subr.bf16.mxu0 %v3091_v10 }
  0x25   :  { %2877 = vmatpush3.bf16.msra.mxu0 %v3091_v10 }
  0x2a   :  { %2847 = vmatmul.mubr.bf16.gmra.mxu1 %v3029_v11 }
  0x2b   :  { %2850 = vmatprep.mubr.bf16.mxu1 %v3030_v12  ;;  %v3279_v12 = vld [vmem:[%s4043_s1 + $0x14] ss:$8 sps:$4 sm:$0xff]  }
  0x32   :  { %2851 = vmatmul.mubr.bf16.gmra.mxu1 %v3031_v13  ;;  %v3092_v13 = vld [vmem:[%s4044_s4 + $0x28] sm:$0xff]  }
  0x33   :  { %2854 = vmatprep.mubr.bf16.mxu1 %v3032_v14  ;;  %2878 = vmatprep.subr.bf16.mxu0 %v3092_v13  ;;  %v3289_v14 = vld [vmem:[%s4043_s1 + $0x10] ss:$8 sps:$4 sm:$0xff]  }
  0x34   :  { %2879 = vmatpush3.bf16.msra.mxu0 %v3092_v13 }
  0x3a   :  { %2855 = vmatmul.mubr.bf16.gmra.mxu1 %v3033_v15  ;;  %v3294_v15 = vld [vmem:[%s4043_s1 + $0x24] ss:$8 sps:$4 sm:$0xff]  }
  0x3b   :  { %2858 = vmatprep.mubr.bf16.mxu1 %v3034_v16  ;;  %v3301_v16 = vld [vmem:[%s4043_s1 + $0x20] ss:$8 sps:$4 sm:$0xff]  }
  0x42   :  { %2859 = vmatmul.mubr.bf16.gmra.mxu1 %v3035_v17  ;;  %v3306_v17 = vld [vmem:[%s4043_s1 + $0x34] ss:$8 sps:$4 sm:$0xff]  }
  0x43   :  { %2862 = vmatprep.mubr.bf16.mxu1 %v3036_v18  ;;  %v3313_v18 = vld [vmem:[%s4043_s1 + $0x30] ss:$8 sps:$4 sm:$0xff]  }
  0x4a   :  { %2863 = vmatmul.mubr.bf16.gmra.mxu1 %v3037_v19  ;;  %v3318_v19 = vld [vmem:[%s4043_s1 + $0x44] ss:$8 sps:$4 sm:$0xff]  }
  0x4b   :  { %2866 = vmatprep.mubr.bf16.mxu1 %v3038_v20  ;;  %v3325_v20 = vld [vmem:[%s4043_s1 + $0x40] ss:$8 sps:$4 sm:$0xff]  }
  0x52   :  { %2867 = vmatmul.mubr.bf16.gmra.mxu1 %v3039_v21  ;;  %v3330_v21 = vld [vmem:[%s4043_s1 + $0x54] ss:$8 sps:$4 sm:$0xff]  }
  0x53   :  { %2870 = vmatprep.mubr.bf16.mxu1 %v3040_v22  ;;  %v3337_v22 = vld [vmem:[%s4043_s1 + $0x50] ss:$8 sps:$4 sm:$0xff]  }
  0x5a   :  { %2871 = vmatmul.mubr.bf16.gmra.mxu1 %v3041_v23  ;;  %v3342_v23 = vld [vmem:[%s4043_s1 + $0x64] ss:$8 sps:$4 sm:$0xff]  }
  0x5b   :  { %624 = vmatprep.mubr.bf16.mxu1 %v3256_v24 }
  0xe2   :  { %v2844_v25 = vpop.f32.mrf.mxu1 }
  0xe4   :  { %v3259_v26 = vpop.f32.mrf.mxu1 }
  0xe6   :  { %v2845_v27 = vpop.f32.mrf.mxu1 }
  0xe7   :  { %v411_v28 = vpack.c.bf16 %v2845_v27, %v2844_v25  ;;  %v3349_v25 = vld [vmem:[%s4043_s1 + $0x60] ss:$8 sps:$4 sm:$0xff]   ;;  %v3361_v27 = vld [vmem:[%s4043_s1 + $0x70] ss:$8 sps:$4 sm:$0xff]  }
  0xe8   :  { %v3261_v29 = vpop.f32.mrf.mxu1 }
  0xe9   :  { %v410_v11 = vpack.c.bf16 %v3261_v29, %v3259_v26  ;;  %v3354_v26 = vld [vmem:[%s4043_s1 + $0x74] ss:$8 sps:$4 sm:$0xff]   ;;  %v3373_v29 = vld [vmem:[%s4043_s1 + $0x80] ss:$8 sps:$4 sm:$0xff]  }
  0xea   :  { %v2848_v30 = vpop.f32.mrf.mxu1 }
  0xec   :  { %v267_v31 = vpop.f32.mrf.mxu1 }
  0xee   :  { %v2849_v32 = vpop.f32.mrf.mxu1 }
  0xef   :  { %v413_v33 = vpack.c.bf16 %v2849_v32, %v2848_v30  ;;  %v3378_v30 = vld [vmem:[%s4043_s1 + $0x94] ss:$8 sps:$4 sm:$0xff]   ;;  %v3388_v32 = vld [vmem:[%s4043_s1 + $0x90] ss:$8 sps:$4 sm:$0xff]  }
  0xf0   :  { %v270_v34 = vpop.f32.mrf.mxu1 }
  0xf1   :  { %v412_v5 = vpack.c.bf16 %v270_v34, %v267_v31  ;;  %v3093_v31 = vld [vmem:[%s4044_s4 + $0x20] sm:$0xff]   ;;  %v3094_v34 = vld [vmem:[%s4044_s4 + $0x18] sm:$0xff]  }
  0xf2   :  { %v2852_v35 = vpop.f32.mrf.mxu1  ;;  %2880 = vmatprep.subr.bf16.mxu0 %v3093_v31 }
  0xf3   :  { %2881 = vmatpush3.bf16.msra.mxu0 %v3093_v31 }
  0xf4   :  { %v283_v36 = vpop.f32.mrf.mxu1  ;;  %2882 = vmatprep.subr.bf16.mxu0 %v3094_v34 }
  0xf6   :  { %v2853_v37 = vpop.f32.mrf.mxu1 }
  0xf7   :  { %v415_v0 = vpack.c.bf16 %v2853_v37, %v2852_v35  ;;  %2883 = vmatpush3.bf16.msra.mxu0 %v3094_v34  ;;  %v3095_v35 = vld [vmem:[%s4044_s4 + $0x10] sm:$0xff]  }
  0xf8   :  { %v286_v38 = vpop.f32.mrf.mxu1  ;;  %2884 = vmatprep.subr.bf16.mxu0 %v3095_v35  ;;  %v3411_v37 = vld [vmem:[%s4043_s1 + $0xb4] ss:$8 sps:$4 sm:$0xff]  }
  0xf9   :  { %v414_v2 = vpack.c.bf16 %v286_v38, %v283_v36  ;;  %v3406_v36 = vld [vmem:[%s4043_s1 + $0xa0] ss:$8 sps:$4 sm:$0xff]  }
  0xfa   :  { %v2856_v39 = vpop.f32.mrf.mxu1  ;;  %v3096_v38 = vld [vmem:[%s4044_s4 + $0x8] sm:$0xff]  }
  0xfb   :  { %2885 = vmatpush3.bf16.msra.mxu0 %v3095_v35 }
  0xfc   :  { %v299_v40 = vpop.f32.mrf.mxu1  ;;  %2886 = vmatprep.subr.bf16.mxu0 %v3096_v38 }
  0xfe   :  { %v2857_v41 = vpop.f32.mrf.mxu1 }
  0xff   :  { %v417_v59 = vpack.c.bf16 %v2857_v41, %v2856_v39  ;;  %2887 = vmatpush3.bf16.msra.mxu0 %v3096_v38  ;;  %v3097_v39 = vld [vmem:[%s4044_s4] sm:$0xff]  }
 0x100   :  { %v302_v42 = vpop.f32.mrf.mxu1  ;;  %2888 = vmatprep.subr.bf16.mxu0 %v3097_v39  ;;  %v3429_v41 = vld [vmem:[%s4043_s1 + $0xc4] ss:$8 sps:$4 sm:$0xff]  }
 0x101   :  { %v416_v62 = vpack.c.bf16 %v302_v42, %v299_v40  ;;  %v3424_v40 = vld [vmem:[%s4043_s1 + $0xb0] ss:$8 sps:$4 sm:$0xff]   ;;  %v3436_v42 = vld [vmem:[%s4043_s1 + $0xc0] ss:$8 sps:$4 sm:$0xff]  }
 0x102   :  { %v2860_v43 = vpop.f32.mrf.mxu1  ;;  %4060 = vst [vmem:[#allocation2_spill] sm:$0xff] %v3436_v42 }
 0x103   :  { %2889 = vmatpush3.bf16.msra.mxu0 %v3097_v39 }
 0x104   :  { %v315_v44 = vpop.f32.mrf.mxu1 }
 0x106   :  { %v2861_v45 = vpop.f32.mrf.mxu1 }
 0x107   :  { %v419_v6 = vpack.c.bf16 %v2861_v45, %v2860_v43  ;;  %v3441_v43 = vld [vmem:[%s4043_s1 + $0xd4] ss:$8 sps:$4 sm:$0xff]   ;;  %v3453_v45 = vld [vmem:[%s4043_s1 + $0xe4] ss:$8 sps:$4 sm:$0xff]  }
 0x108   :  { %v318_v46 = vpop.f32.mrf.mxu1  ;;  %4061 = vst [vmem:[#allocation3_spill] sm:$0xff] %v3441_v43  ;;  %4063 = vst [vmem:[#allocation5_spill] sm:$0xff] %v3453_v45 }
 0x109   :  { %v418_v7 = vpack.c.bf16 %v318_v46, %v315_v44  ;;  %v3448_v44 = vld [vmem:[%s4043_s1 + $0xd0] ss:$8 sps:$4 sm:$0xff]   ;;  %v3460_v46 = vld [vmem:[%s4043_s1 + $0xe0] ss:$8 sps:$4 sm:$0xff]  }
 0x10a   :  { %v2864_v47 = vpop.f32.mrf.mxu1  ;;  %4062 = vst [vmem:[#allocation4_spill] sm:$0xff] %v3448_v44  ;;  %4064 = vst [vmem:[#allocation6_spill] sm:$0xff] %v3460_v46 }
 0x10c   :  { %v331_v48 = vpop.f32.mrf.mxu1 }
 0x10e   :  { %v2865_v49 = vpop.f32.mrf.mxu1 }
 0x10f   :  { %v421_v3 = vpack.c.bf16 %v2865_v49, %v2864_v47  ;;  %v3465_v47 = vld [vmem:[%s4043_s1 + $0xf4] ss:$8 sps:$4 sm:$0xff]  }
 0x110   :  { %v334_v50 = vpop.f32.mrf.mxu1  ;;  %4065 = vst [vmem:[#allocation7_spill] sm:$0xff] %v3465_v47 }
 0x111   :  { %v420_v4 = vpack.c.bf16 %v334_v50, %v331_v48  ;;  %v3472_v48 = vld [vmem:[%s4043_s1 + $0xf0] ss:$8 sps:$4 sm:$0xff]  }
 0x112   :  { %v2868_v51 = vpop.f32.mrf.mxu1  ;;  %4066 = vst [vmem:[#allocation8_spill] sm:$0xff] %v3472_v48 }
 0x114   :  { %v347_v52 = vpop.f32.mrf.mxu1 }
 0x116   :  { %v2869_v53 = vpop.f32.mrf.mxu1 }
 0x117   :  { %v423_v63 = vpack.c.bf16 %v2869_v53, %v2868_v51  ;;  %v3478_v53 = vld [vmem:[%s4045_s3] ss:$0 sm:$0xff] }
 0x118   :  { %v350_v54 = vpop.f32.mrf.mxu1 }
 0x119   :  { %v422_v1 = vpack.c.bf16 %v350_v54, %v347_v52 }
 0x11a   :  { %v2872_v55 = vpop.f32.mrf.mxu1 }
 0x11c   :  { %v363_v56 = vpop.f32.mrf.mxu1 }
 0x11e   :  { %v2873_v57 = vpop.f32.mrf.mxu1 }
 0x11f   :  { %v425_v58 = vpack.c.bf16 %v2873_v57, %v2872_v55 }
 0x120   :  { %v366_v60 = vpop.f32.mrf.mxu1 }
 0x121   :  { %v424_v61 = vpack.c.bf16 %v366_v60, %v363_v56  ;;  %2306 = vmatprep.subr.bf16.mxu1 %v425_v58 }
 0x122   :  { %2307 = vmatpush3.bf16.msra.mxu1 %v417_v59 }
 0x123   :  { %2308 = vmatprep.subr.bf16.mxu1 %v424_v61 }
 0x126   :  { %2309 = vmatpush3.bf16.msra.mxu1 %v416_v62 }
 0x127   :  { %2310 = vmatprep.subr.bf16.mxu1 %v423_v63 }
 0x12a   :  { %2311 = vmatpush3.bf16.msra.mxu1 %v415_v0 }
 0x12b   :  { %2312 = vmatprep.subr.bf16.mxu1 %v422_v1 }
 0x12e   :  { %2313 = vmatpush3.bf16.msra.mxu1 %v414_v2 }
 0x12f   :  { %2314 = vmatprep.subr.bf16.mxu1 %v421_v3 }
 0x132   :  { %2315 = vmatpush3.bf16.msra.mxu1 %v413_v33  ;;  %v3393_v33 = vld [vmem:[%s4043_s1 + $0xa4] ss:$8 sps:$4 sm:$0xff]  }
 0x133   :  { %2316 = vmatprep.subr.bf16.mxu1 %v420_v4 }
 0x136   :  { %2317 = vmatpush3.bf16.msra.mxu1 %v412_v5 }
 0x137   :  { %2318 = vmatprep.subr.bf16.mxu1 %v419_v6 }
 0x13a   :  { %2319 = vmatpush3.bf16.msra.mxu1 %v411_v28  ;;  %v3366_v28 = vld [vmem:[%s4043_s1 + $0x84] ss:$8 sps:$4 sm:$0xff]  }
 0x13b   :  { %2320 = vmatprep.subr.bf16.mxu1 %v418_v7 }
 0x13e   :  { %2321 = vmatpush3.bf16.msra.mxu1 %v410_v11 }
 0x141   :  { %625 = vmatmul.mubr.bf16.vlgmr.msra.gmra.mxu1 %v3269_v9 }
 0x142   :  { %632 = vmatprep.mubr.bf16.mxu1 %v3279_v12 }
 0x149   :  { %633 = vmatmul.mubr.bf16.gmra.mxu1 %v3289_v14 }
 0x14a   :  { %640 = vmatprep.mubr.bf16.mxu1 %v3294_v15 }
 0x151   :  { %641 = vmatmul.mubr.bf16.gmra.mxu1 %v3301_v16 }
 0x152   :  { %648 = vmatprep.mubr.bf16.mxu1 %v3306_v17 }
 0x159   :  { %649 = vmatmul.mubr.bf16.gmra.mxu1 %v3313_v18 }
 0x15a   :  { %656 = vmatprep.mubr.bf16.mxu1 %v3318_v19 }
 0x161   :  { %657 = vmatmul.mubr.bf16.gmra.mxu1 %v3325_v20 }
 0x162   :  { %664 = vmatprep.mubr.bf16.mxu1 %v3330_v21 }
 0x169   :  { %665 = vmatmul.mubr.bf16.gmra.mxu1 %v3337_v22 }
 0x16a   :  { %672 = vmatprep.mubr.bf16.mxu1 %v3342_v23 }
 0x171   :  { %673 = vmatmul.mubr.bf16.gmra.mxu1 %v3349_v25 }
 0x172   :  { %680 = vmatprep.mubr.bf16.mxu1 %v3354_v26 }
 0x179   :  { %681 = vmatmul.mubr.bf16.gmra.mxu1 %v3361_v27 }
 0x17a   :  { %688 = vmatprep.mubr.bf16.mxu1 %v3366_v28 }
 0x181   :  { %689 = vmatmul.mubr.bf16.gmra.mxu1 %v3373_v29 }
 0x182   :  { %696 = vmatprep.mubr.bf16.mxu1 %v3378_v30 }
 0x189   :  { %697 = vmatmul.mubr.bf16.gmra.mxu1 %v3388_v32 }
 0x18a   :  { %704 = vmatprep.mubr.bf16.mxu1 %v3393_v33 }
 0x191   :  { %705 = vmatmul.mubr.bf16.gmra.mxu1 %v3406_v36 }
 0x192   :  { %712 = vmatprep.mubr.bf16.mxu1 %v3411_v37 }
 0x199   :  { %713 = vmatmul.mubr.bf16.gmra.mxu1 %v3424_v40 }
 0x19a   :  { %720 = vmatprep.mubr.bf16.mxu1 %v3429_v41 }
 0x1a1   :  { %721 = vmatmul.mubr.bf16.gmra.mxu1 %v3436_v42 }
 0x1a2   :  { %728 = vmatprep.mubr.bf16.mxu1 %v3441_v43 }
 0x1a9   :  { %729 = vmatmul.mubr.bf16.gmra.mxu1 %v3448_v44 }
 0x1aa   :  { %736 = vmatprep.mubr.bf16.mxu1 %v3453_v45 }
 0x1b1   :  { %737 = vmatmul.mubr.bf16.gmra.mxu1 %v3460_v46 }
 0x1b2   :  { %744 = vmatprep.mubr.bf16.mxu1 %v3465_v47 }
 0x1b9   :  { %745 = vmatmul.mubr.bf16.gmra.mxu1 %v3472_v48 }
 0x201   :  { %v2322_v49 = vpop.f32.mrf.mxu1 }
 0x203   :  { %v2323_v50 = vpop.f32.mrf.mxu1 }
 0x204   :  { %v2324_v51 = vadd.f32 %v2323_v50, %v2322_v49 }
 0x205   :  { %v2325_v52 = vpop.f32.mrf.mxu1 }
 0x206   :  { %v627_v56 = vadd.f32 %v2324_v51, %v3478_v53 }
 0x207   :  { %v2326_v54 = vpop.f32.mrf.mxu1 }
 0x208   :  { %v2327_v55 = vadd.f32 %v2326_v54, %v2325_v52  ;;  %v753_v61 = vmax.f32 %v627_v56, 0.0 }
 0x209   :  { %v2328_v57 = vpop.f32.mrf.mxu1 }
 0x20a   :  { %v630_v58 = vadd.f32 %v2327_v55, %v3478_v53 }
 0x20b   :  { %v2329_v59 = vpop.f32.mrf.mxu1 }
 0x20c   :  { %v2330_v60 = vadd.f32 %v2329_v59, %v2328_v57  ;;  %v754_v62 = vmax.f32 %v630_v58, 0.0 }
 0x20d   :  { %v2331_v63 = vpop.f32.mrf.mxu1 }
 0x20e   :  { %v785_v0 = vpack.c.bf16 %v754_v62, %v753_v61  ;;  %v635_v2 = vadd.f32 %v2330_v60, %v3478_v53 }
 0x20f   :  { %v2332_v1 = vpop.f32.mrf.mxu1 }
 0x210   :  { %v2333_v3 = vadd.f32 %v2332_v1, %v2331_v63  ;;  %2890 = vmatprep.mubr.bf16.mxu0 %v785_v0  ;;  %v755_v7 = vmax.f32 %v635_v2, 0.0 }
 0x211   :  { %v2334_v4 = vpop.f32.mrf.mxu1 }
 0x212   :  { %v638_v5 = vadd.f32 %v2333_v3, %v3478_v53 }
 0x213   :  { %v2335_v6 = vpop.f32.mrf.mxu1 }
 0x214   :  { %v756_v8 = vmax.f32 %v638_v5, 0.0  ;;  %v2336_v10 = vadd.f32 %v2335_v6, %v2334_v4 }
 0x215   :  { %v2337_v11 = vpop.f32.mrf.mxu1 }
 0x216   :  { %v786_v13 = vpack.c.bf16 %v756_v8, %v755_v7  ;;  %v643_v34 = vadd.f32 %v2336_v10, %v3478_v53 }
 0x217   :  { %v2338_v31 = vpop.f32.mrf.mxu1 }
 0x218   :  { %v2339_v35 = vadd.f32 %v2338_v31, %v2337_v11  ;;  %2891 = vmatmul.mubr.bf16.vlgmr.msra.gmra.mxu0 %v786_v13  ;;  %v757_v50 = vmax.f32 %v643_v34, 0.0 }
 0x219   :  { %v2340_v38 = vpop.f32.mrf.mxu1 }
 0x21a   :  { %v646_v39 = vadd.f32 %v2339_v35, %v3478_v53 }
 0x21b   :  { %v2341_v49 = vpop.f32.mrf.mxu1 }
 0x21c   :  { %v758_v51 = vmax.f32 %v646_v39, 0.0  ;;  %v2342_v52 = vadd.f32 %v2341_v49, %v2340_v38 }
 0x21d   :  { %v2343_v54 = vpop.f32.mrf.mxu1 }
 0x21e   :  { %v787_v55 = vpack.c.bf16 %v758_v51, %v757_v50  ;;  %v651_v57 = vadd.f32 %v2342_v52, %v3478_v53 }
 0x21f   :  { %v2344_v56 = vpop.f32.mrf.mxu1 }
 0x220   :  { %v2345_v58 = vadd.f32 %v2344_v56, %v2343_v54  ;;  %2894 = vmatprep.mubr.bf16.mxu0 %v787_v55  ;;  %v759_v62 = vmax.f32 %v651_v57, 0.0 }
 0x221   :  { %v2346_v59 = vpop.f32.mrf.mxu1 }
 0x222   :  { %v654_v60 = vadd.f32 %v2345_v58, %v3478_v53 }
 0x223   :  { %v2347_v61 = vpop.f32.mrf.mxu1 }
 0x224   :  { %v760_v63 = vmax.f32 %v654_v60, 0.0  ;;  %v2348_v0 = vadd.f32 %v2347_v61, %v2346_v59 }
 0x225   :  { %v2349_v1 = vpop.f32.mrf.mxu1 }
 0x226   :  { %v788_v2 = vpack.c.bf16 %v760_v63, %v759_v62  ;;  %v659_v4 = vadd.f32 %v2348_v0, %v3478_v53 }
 0x227   :  { %v2350_v3 = vpop.f32.mrf.mxu1 }
 0x228   :  { %v2351_v5 = vadd.f32 %v2350_v3, %v2349_v1  ;;  %2895 = vmatmul.mubr.bf16.gmra.mxu0 %v788_v2  ;;  %v761_v10 = vmax.f32 %v659_v4, 0.0 }
 0x229   :  { %v2352_v6 = vpop.f32.mrf.mxu1 }
 0x22a   :  { %v662_v7 = vadd.f32 %v2351_v5, %v3478_v53 }
 0x22b   :  { %v2353_v8 = vpop.f32.mrf.mxu1 }
 0x22c   :  { %v762_v11 = vmax.f32 %v662_v7, 0.0  ;;  %v2354_v13 = vadd.f32 %v2353_v8, %v2352_v6 }
 0x22d   :  { %v2355_v31 = vpop.f32.mrf.mxu1 }
 0x22e   :  { %v789_v34 = vpack.c.bf16 %v762_v11, %v761_v10  ;;  %v667_v38 = vadd.f32 %v2354_v13, %v3478_v53 }
 0x22f   :  { %v2356_v35 = vpop.f32.mrf.mxu1 }
 0x230   :  { %v2357_v39 = vadd.f32 %v2356_v35, %v2355_v31  ;;  %2898 = vmatprep.mubr.bf16.mxu0 %v789_v34  ;;  %v763_v52 = vmax.f32 %v667_v38, 0.0 }
 0x231   :  { %v2358_v49 = vpop.f32.mrf.mxu1 }
 0x232   :  { %v670_v50 = vadd.f32 %v2357_v39, %v3478_v53 }
 0x233   :  { %v2359_v51 = vpop.f32.mrf.mxu1 }
 0x234   :  { %v764_v54 = vmax.f32 %v670_v50, 0.0  ;;  %v2360_v55 = vadd.f32 %v2359_v51, %v2358_v49 }
 0x235   :  { %v2361_v56 = vpop.f32.mrf.mxu1 }
 0x236   :  { %v790_v57 = vpack.c.bf16 %v764_v54, %v763_v52  ;;  %v675_v59 = vadd.f32 %v2360_v55, %v3478_v53 }
 0x237   :  { %v2362_v58 = vpop.f32.mrf.mxu1 }
 0x238   :  { %v2363_v60 = vadd.f32 %v2362_v58, %v2361_v56  ;;  %2899 = vmatmul.mubr.bf16.gmra.mxu0 %v790_v57  ;;  %v765_v0 = vmax.f32 %v675_v59, 0.0 }
 0x239   :  { %v2364_v61 = vpop.f32.mrf.mxu1 }
 0x23a   :  { %v678_v62 = vadd.f32 %v2363_v60, %v3478_v53 }
 0x23b   :  { %v2365_v63 = vpop.f32.mrf.mxu1 }
 0x23c   :  { %v766_v1 = vmax.f32 %v678_v62, 0.0  ;;  %v2366_v2 = vadd.f32 %v2365_v63, %v2364_v61 }
 0x23d   :  { %v2367_v3 = vpop.f32.mrf.mxu1 }
 0x23e   :  { %v791_v4 = vpack.c.bf16 %v766_v1, %v765_v0  ;;  %v683_v6 = vadd.f32 %v2366_v2, %v3478_v53 }
 0x23f   :  { %v2368_v5 = vpop.f32.mrf.mxu1 }
 0x240   :  { %v2369_v7 = vadd.f32 %v2368_v5, %v2367_v3  ;;  %2902 = vmatprep.mubr.bf16.mxu0 %v791_v4  ;;  %v767_v13 = vmax.f32 %v683_v6, 0.0 }
 0x241   :  { %v2370_v8 = vpop.f32.mrf.mxu1 }
 0x242   :  { %v686_v10 = vadd.f32 %v2369_v7, %v3478_v53 }
 0x243   :  { %v2371_v11 = vpop.f32.mrf.mxu1 }
 0x244   :  { %v768_v31 = vmax.f32 %v686_v10, 0.0  ;;  %v2372_v34 = vadd.f32 %v2371_v11, %v2370_v8 }
 0x245   :  { %v2373_v35 = vpop.f32.mrf.mxu1 }
 0x246   :  { %v792_v38 = vpack.c.bf16 %v768_v31, %v767_v13  ;;  %v691_v49 = vadd.f32 %v2372_v34, %v3478_v53 }
 0x247   :  { %v2374_v39 = vpop.f32.mrf.mxu1 }
 0x248   :  { %v2375_v50 = vadd.f32 %v2374_v39, %v2373_v35  ;;  %2903 = vmatmul.mubr.bf16.gmra.mxu0 %v792_v38  ;;  %v769_v55 = vmax.f32 %v691_v49, 0.0 }
 0x249   :  { %v2376_v51 = vpop.f32.mrf.mxu1 }
 0x24a   :  { %v694_v52 = vadd.f32 %v2375_v50, %v3478_v53 }
 0x24b   :  { %v2377_v54 = vpop.f32.mrf.mxu1 }
 0x24c   :  { %v770_v56 = vmax.f32 %v694_v52, 0.0  ;;  %v2378_v57 = vadd.f32 %v2377_v54, %v2376_v51 }
 0x24d   :  { %v2379_v58 = vpop.f32.mrf.mxu1 }
 0x24e   :  { %v793_v59 = vpack.c.bf16 %v770_v56, %v769_v55  ;;  %v699_v61 = vadd.f32 %v2378_v57, %v3478_v53 }
 0x24f   :  { %v2380_v60 = vpop.f32.mrf.mxu1 }
 0x250   :  { %v2381_v62 = vadd.f32 %v2380_v60, %v2379_v58  ;;  %2906 = vmatprep.mubr.bf16.mxu0 %v793_v59  ;;  %v771_v2 = vmax.f32 %v699_v61, 0.0 }
 0x251   :  { %v2382_v63 = vpop.f32.mrf.mxu1 }
 0x252   :  { %v702_v0 = vadd.f32 %v2381_v62, %v3478_v53 }
 0x253   :  { %v2383_v1 = vpop.f32.mrf.mxu1 }
 0x254   :  { %v772_v3 = vmax.f32 %v702_v0, 0.0  ;;  %v2384_v4 = vadd.f32 %v2383_v1, %v2382_v63 }
 0x255   :  { %v2385_v5 = vpop.f32.mrf.mxu1 }
 0x256   :  { %v794_v6 = vpack.c.bf16 %v772_v3, %v771_v2  ;;  %v707_v8 = vadd.f32 %v2384_v4, %v3478_v53 }
 0x257   :  { %v2386_v7 = vpop.f32.mrf.mxu1 }
 0x258   :  { %v2387_v10 = vadd.f32 %v2386_v7, %v2385_v5  ;;  %2907 = vmatmul.mubr.bf16.gmra.mxu0 %v794_v6  ;;  %v773_v34 = vmax.f32 %v707_v8, 0.0 }
 0x259   :  { %v2388_v11 = vpop.f32.mrf.mxu1 }
 0x25a   :  { %v710_v13 = vadd.f32 %v2387_v10, %v3478_v53 }
 0x25b   :  { %v2389_v31 = vpop.f32.mrf.mxu1 }
 0x25c   :  { %v774_v35 = vmax.f32 %v710_v13, 0.0  ;;  %v2390_v38 = vadd.f32 %v2389_v31, %v2388_v11 }
 0x25d   :  { %v2391_v39 = vpop.f32.mrf.mxu1 }
 0x25e   :  { %v795_v49 = vpack.c.bf16 %v774_v35, %v773_v34  ;;  %v715_v51 = vadd.f32 %v2390_v38, %v3478_v53 }
 0x25f   :  { %v2392_v50 = vpop.f32.mrf.mxu1 }
 0x260   :  { %v2393_v52 = vadd.f32 %v2392_v50, %v2391_v39  ;;  %2910 = vmatprep.mubr.bf16.mxu0 %v795_v49  ;;  %v775_v57 = vmax.f32 %v715_v51, 0.0 }
 0x261   :  { %v2394_v54 = vpop.f32.mrf.mxu1 }
 0x262   :  { %v718_v55 = vadd.f32 %v2393_v52, %v3478_v53 }
 0x263   :  { %v2395_v56 = vpop.f32.mrf.mxu1 }
 0x264   :  { %v776_v58 = vmax.f32 %v718_v55, 0.0  ;;  %v2396_v59 = vadd.f32 %v2395_v56, %v2394_v54 }
 0x265   :  { %v2397_v60 = vpop.f32.mrf.mxu1 }
 0x266   :  { %v796_v61 = vpack.c.bf16 %v776_v58, %v775_v57  ;;  %v723_v63 = vadd.f32 %v2396_v59, %v3478_v53 }
 0x267   :  { %v2398_v62 = vpop.f32.mrf.mxu1 }
 0x268   :  { %v2399_v0 = vadd.f32 %v2398_v62, %v2397_v60  ;;  %2911 = vmatmul.mubr.bf16.gmra.mxu0 %v796_v61  ;;  %v777_v4 = vmax.f32 %v723_v63, 0.0 }
 0x269   :  { %v2400_v1 = vpop.f32.mrf.mxu1 }
 0x26a   :  { %v726_v2 = vadd.f32 %v2399_v0, %v3478_v53 }
 0x26b   :  { %v2401_v3 = vpop.f32.mrf.mxu1 }
 0x26c   :  { %v778_v5 = vmax.f32 %v726_v2, 0.0  ;;  %v2402_v6 = vadd.f32 %v2401_v3, %v2400_v1 }
 0x26d   :  { %v2403_v7 = vpop.f32.mrf.mxu1 }
 0x26e   :  { %v797_v8 = vpack.c.bf16 %v778_v5, %v777_v4  ;;  %v731_v11 = vadd.f32 %v2402_v6, %v3478_v53 }
 0x26f   :  { %v2404_v10 = vpop.f32.mrf.mxu1 }
 0x270   :  { %v2405_v13 = vadd.f32 %v2404_v10, %v2403_v7  ;;  %2914 = vmatprep.mubr.bf16.mxu0 %v797_v8  ;;  %v779_v38 = vmax.f32 %v731_v11, 0.0 }
 0x271   :  { %v2406_v31 = vpop.f32.mrf.mxu1 }
 0x272   :  { %v734_v34 = vadd.f32 %v2405_v13, %v3478_v53 }
 0x273   :  { %v2407_v35 = vpop.f32.mrf.mxu1 }
 0x274   :  { %v780_v39 = vmax.f32 %v734_v34, 0.0  ;;  %v2408_v49 = vadd.f32 %v2407_v35, %v2406_v31 }
 0x275   :  { %v2409_v50 = vpop.f32.mrf.mxu1 }
 0x276   :  { %v798_v51 = vpack.c.bf16 %v780_v39, %v779_v38  ;;  %v739_v54 = vadd.f32 %v2408_v49, %v3478_v53 }
 0x277   :  { %v2410_v52 = vpop.f32.mrf.mxu1 }
 0x278   :  { %v2411_v55 = vadd.f32 %v2410_v52, %v2409_v50  ;;  %2915 = vmatmul.mubr.bf16.gmra.mxu0 %v798_v51  ;;  %v781_v59 = vmax.f32 %v739_v54, 0.0 }
 0x279   :  { %v2412_v56 = vpop.f32.mrf.mxu1 }
 0x27a   :  { %v742_v57 = vadd.f32 %v2411_v55, %v3478_v53 }
 0x27b   :  { %v2413_v58 = vpop.f32.mrf.mxu1 }
 0x27c   :  { %v782_v60 = vmax.f32 %v742_v57, 0.0  ;;  %v2414_v61 = vadd.f32 %v2413_v58, %v2412_v56 }
 0x27d   :  { %v2415_v62 = vpop.f32.mrf.mxu1 }
 0x27e   :  { %v799_v63 = vpack.c.bf16 %v782_v60, %v781_v59  ;;  %v747_v1 = vadd.f32 %v2414_v61, %v3478_v53 }
 0x27f   :  { %v2416_v0 = vpop.f32.mrf.mxu1 }
 0x280   :  { %v2417_v2 = vadd.f32 %v2416_v0, %v2415_v62  ;;  %2918 = vmatprep.mubr.bf16.mxu0 %v799_v63  ;;  %v783_v4 = vmax.f32 %v747_v1, 0.0 }
 0x282   :  { %v750_v3 = vadd.f32 %v2417_v2, %v3478_v53 }
 0x284   :  { %v784_v5 = vmax.f32 %v750_v3, 0.0 }
 0x286   :  { %v800_v6 = vpack.c.bf16 %v784_v5, %v783_v4 }
 0x288   :  { %2919 = vmatmul.mubr.bf16.gmra.mxu0 %v800_v6 }
 0x289   :  { %1081 = vmatprep.mubr.bf16.mxu0 %v3256_v24 }
 0x2d8   :  { %v2892_v7 = vpop.f32.mrf.mxu0 }
 0x2da   :  { %v3513_v8 = vpop.f32.mrf.mxu0 }
 0x2dc   :  { %v2893_v10 = vpop.f32.mrf.mxu0 }
 0x2dd   :  { %v1028_v11 = vpack.c.bf16 %v2893_v10, %v2892_v7 }
 0x2de   :  { %v3515_v13 = vpop.f32.mrf.mxu0 }
 0x2e8   :  { %v2896_v31 = vpop.f32.mrf.mxu0 }
 0x2ea   :  { %v916_v34 = vpop.f32.mrf.mxu0 }
 0x2ec   :  { %v2897_v35 = vpop.f32.mrf.mxu0 }
 0x2ed   :  { %v1030_v38 = vpack.c.bf16 %v2897_v35, %v2896_v31 }
 0x2ee   :  { %v919_v39 = vpop.f32.mrf.mxu0 }
 0x2f8   :  { %v2900_v49 = vpop.f32.mrf.mxu0 }
 0x2fa   :  { %v932_v53 = vpop.f32.mrf.mxu0 }
 0x2fc   :  { %v2901_v50 = vpop.f32.mrf.mxu0 }
 0x2fd   :  { %v1032_v46 = vpack.c.bf16 %v2901_v50, %v2900_v49 }
 0x2fe   :  { %v935_v51 = vpop.f32.mrf.mxu0 }
 0x2ff   :  { %v1031_v44 = vpack.c.bf16 %v935_v51, %v932_v53 }
 0x308   :  { %v2904_v52 = vpop.f32.mrf.mxu0 }
 0x30a   :  { %v948_v54 = vpop.f32.mrf.mxu0 }
 0x30c   :  { %v2905_v55 = vpop.f32.mrf.mxu0 }
 0x30d   :  { %v1034_v10 = vpack.c.bf16 %v2905_v55, %v2904_v52  ;;  %v1029_v52 = vpack.c.bf16 %v919_v39, %v916_v34 }
 0x30e   :  { %v951_v24 = vpop.f32.mrf.mxu0 }
 0x30f   :  { %v1033_v48 = vpack.c.bf16 %v951_v24, %v948_v54 }
 0x318   :  { %v2908_v56 = vpop.f32.mrf.mxu0 }
 0x31a   :  { %v964_v57 = vpop.f32.mrf.mxu0 }
 0x31c   :  { %v2909_v58 = vpop.f32.mrf.mxu0 }
 0x31d   :  { %v1036_v55 = vpack.c.bf16 %v2909_v58, %v2908_v56 }
 0x31e   :  { %v967_v59 = vpop.f32.mrf.mxu0 }
 0x328   :  { %v2912_v60 = vpop.f32.mrf.mxu0 }
 0x32a   :  { %v980_v61 = vpop.f32.mrf.mxu0 }
 0x32c   :  { %v2913_v62 = vpop.f32.mrf.mxu0 }
 0x32d   :  { %v1038_v43 = vpack.c.bf16 %v2913_v62, %v2912_v60 }
 0x32e   :  { %v983_v63 = vpop.f32.mrf.mxu0 }
 0x32f   :  { %v1037_v42 = vpack.c.bf16 %v983_v63, %v980_v61 }
 0x338   :  { %v2916_v0 = vpop.f32.mrf.mxu0 }
 0x33a   :  { %v996_v1 = vpop.f32.mrf.mxu0 }
 0x33c   :  { %v2917_v2 = vpop.f32.mrf.mxu0 }
 0x33d   :  { %v1040_v47 = vpack.c.bf16 %v2917_v2, %v2916_v0 }
 0x33e   :  { %v999_v3 = vpop.f32.mrf.mxu0 }
 0x33f   :  { %v1039_v45 = vpack.c.bf16 %v999_v3, %v996_v1 }
 0x348   :  { %v2920_v4 = vpop.f32.mrf.mxu0 }
 0x34a   :  { %v1012_v5 = vpop.f32.mrf.mxu0 }
 0x34c   :  { %v2921_v6 = vpop.f32.mrf.mxu0 }
 0x34d   :  { %v1042_v7 = vpack.c.bf16 %v2921_v6, %v2920_v4  ;;  %v1035_v4 = vpack.c.bf16 %v967_v59, %v964_v57 }
 0x34e   :  { %v1015_v31 = vpop.f32.mrf.mxu0 }
 0x34f   :  { %v1041_v35 = vpack.c.bf16 %v1015_v31, %v1012_v5  ;;  %2442 = vmatprep.subr.bf16.mxu0 %v1042_v7 }
 0x350   :  { %2443 = vmatpush3.bf16.msra.mxu0 %v1034_v10 }
 0x351   :  { %2444 = vmatprep.subr.bf16.mxu0 %v1041_v35 }
 0x354   :  { %2445 = vmatpush3.bf16.msra.mxu0 %v1033_v48 }
 0x355   :  { %2446 = vmatprep.subr.bf16.mxu0 %v1040_v47  ;;  %v3098_v47 = vld [vmem:[%s4044_s4 + $0x78] sm:$0xff]  }
 0x356   :  { %2922 = vmatprep.subr.bf16.mxu1 %v3098_v47 }
 0x357   :  { %2923 = vmatpush3.bf16.msra.mxu1 %v3098_v47 }
 0x358   :  { %2447 = vmatpush3.bf16.msra.mxu0 %v1032_v46 }
 0x359   :  { %2448 = vmatprep.subr.bf16.mxu0 %v1039_v45  ;;  %v3099_v45 = vld [vmem:[%s4044_s4 + $0x70] sm:$0xff]  }
 0x35a   :  { %2924 = vmatprep.subr.bf16.mxu1 %v3099_v45 }
 0x35b   :  { %2925 = vmatpush3.bf16.msra.mxu1 %v3099_v45 }
 0x35c   :  { %2449 = vmatpush3.bf16.msra.mxu0 %v1031_v44 }
 0x35d   :  { %2450 = vmatprep.subr.bf16.mxu0 %v1038_v43  ;;  %v1027_v43 = vpack.c.bf16 %v3515_v13, %v3513_v8 }
 0x360   :  { %2451 = vmatpush3.bf16.msra.mxu0 %v1030_v38 }
 0x361   :  { %2452 = vmatprep.subr.bf16.mxu0 %v1037_v42  ;;  %v3100_v42 = vld [vmem:[%s4044_s4 + $0x68] sm:$0xff]  }
 0x362   :  { %2926 = vmatprep.subr.bf16.mxu1 %v3100_v42 }
 0x363   :  { %2927 = vmatpush3.bf16.msra.mxu1 %v3100_v42 }
 0x364   :  { %2453 = vmatpush3.bf16.msra.mxu0 %v1029_v52 }
 0x365   :  { %2454 = vmatprep.subr.bf16.mxu0 %v1036_v55 }
 0x368   :  { %2455 = vmatpush3.bf16.msra.mxu0 %v1028_v11 }
 0x369   :  { %2456 = vmatprep.subr.bf16.mxu0 %v1035_v4 }
 0x36c   :  { %2457 = vmatpush3.bf16.msra.mxu0 %v1027_v43 }
 0x36f   :  { %1082 = vmatmul.mubr.bf16.vlgmr.msra.gmra.mxu0 %v3269_v9  ;;  %v3101_v9 = vld [vmem:[%s4044_s4 + $0x60] sm:$0xff]  }
 0x370   :  { %1089 = vmatprep.mubr.bf16.mxu0 %v3279_v12  ;;  %2928 = vmatprep.subr.bf16.mxu1 %v3101_v9  ;;  %v3102_v12 = vld [vmem:[%s4044_s4 + $0x58] sm:$0xff]  }
 0x371   :  { %2929 = vmatpush3.bf16.msra.mxu1 %v3101_v9 }
 0x372   :  { %2930 = vmatprep.subr.bf16.mxu1 %v3102_v12 }
 0x375   :  { %2931 = vmatpush3.bf16.msra.mxu1 %v3102_v12 }
 0x377   :  { %1090 = vmatmul.mubr.bf16.gmra.mxu0 %v3289_v14  ;;  %v3103_v14 = vld [vmem:[%s4044_s4 + $0x50] sm:$0xff]  }
 0x378   :  { %1097 = vmatprep.mubr.bf16.mxu0 %v3294_v15  ;;  %2932 = vmatprep.subr.bf16.mxu1 %v3103_v14  ;;  %v3104_v15 = vld [vmem:[%s4044_s4 + $0x48] sm:$0xff]  }
 0x379   :  { %2933 = vmatpush3.bf16.msra.mxu1 %v3103_v14 }
 0x37a   :  { %2934 = vmatprep.subr.bf16.mxu1 %v3104_v15 }
 0x37d   :  { %2935 = vmatpush3.bf16.msra.mxu1 %v3104_v15 }
 0x37f   :  { %1098 = vmatmul.mubr.bf16.gmra.mxu0 %v3301_v16  ;;  %v3105_v16 = vld [vmem:[%s4044_s4 + $0x40] sm:$0xff]  }
 0x380   :  { %1105 = vmatprep.mubr.bf16.mxu0 %v3306_v17  ;;  %2936 = vmatprep.subr.bf16.mxu1 %v3105_v16  ;;  %v4067_v17 = vld [vmem:[#allocation2_spill] sm:$0xff] }
 0x381   :  { %2937 = vmatpush3.bf16.msra.mxu1 %v3105_v16 }
 0x387   :  { %1106 = vmatmul.mubr.bf16.gmra.mxu0 %v3313_v18  ;;  %v4068_v18 = vld [vmem:[#allocation3_spill] sm:$0xff] }
 0x388   :  { %1113 = vmatprep.mubr.bf16.mxu0 %v3318_v19  ;;  %v4069_v19 = vld [vmem:[#allocation4_spill] sm:$0xff] }
 0x38f   :  { %1114 = vmatmul.mubr.bf16.gmra.mxu0 %v3325_v20  ;;  %v4070_v20 = vld [vmem:[#allocation5_spill] sm:$0xff] }
 0x390   :  { %1121 = vmatprep.mubr.bf16.mxu0 %v3330_v21  ;;  %v4071_v21 = vld [vmem:[#allocation6_spill] sm:$0xff] }
 0x397   :  { %1122 = vmatmul.mubr.bf16.gmra.mxu0 %v3337_v22  ;;  %v4072_v22 = vld [vmem:[#allocation7_spill] sm:$0xff] }
 0x398   :  { %1129 = vmatprep.mubr.bf16.mxu0 %v3342_v23  ;;  %v4073_v23 = vld [vmem:[#allocation8_spill] sm:$0xff] }
 0x39f   :  { %1130 = vmatmul.mubr.bf16.gmra.mxu0 %v3349_v25 }
 0x3a0   :  { %1137 = vmatprep.mubr.bf16.mxu0 %v3354_v26 }
 0x3a7   :  { %1138 = vmatmul.mubr.bf16.gmra.mxu0 %v3361_v27 }
 0x3a8   :  { %1145 = vmatprep.mubr.bf16.mxu0 %v3366_v28  ;;  %v3577_v28 = vld [vmem:[%s4046_s5] ss:$0 sm:$0xff] }
 0x3af   :  { %1146 = vmatmul.mubr.bf16.gmra.mxu0 %v3373_v29 }
 0x3b0   :  { %1153 = vmatprep.mubr.bf16.mxu0 %v3378_v30 }
 0x3b7   :  { %1154 = vmatmul.mubr.bf16.gmra.mxu0 %v3388_v32 }
 0x3b8   :  { %1161 = vmatprep.mubr.bf16.mxu0 %v3393_v33 }
 0x3bf   :  { %1162 = vmatmul.mubr.bf16.gmra.mxu0 %v3406_v36 }
 0x3c0   :  { %1169 = vmatprep.mubr.bf16.mxu0 %v3411_v37 }
 0x3c7   :  { %1170 = vmatmul.mubr.bf16.gmra.mxu0 %v3424_v40 }
 0x3c8   :  { %1177 = vmatprep.mubr.bf16.mxu0 %v3429_v41 }
 0x3cf   :  { %1178 = vmatmul.mubr.bf16.gmra.mxu0 %v4067_v17 }
 0x3d0   :  { %1185 = vmatprep.mubr.bf16.mxu0 %v4068_v18 }
 0x3d7   :  { %1186 = vmatmul.mubr.bf16.gmra.mxu0 %v4069_v19 }
 0x3d8   :  { %1193 = vmatprep.mubr.bf16.mxu0 %v4070_v20 }
 0x3df   :  { %1194 = vmatmul.mubr.bf16.gmra.mxu0 %v4071_v21 }
 0x3e0   :  { %1201 = vmatprep.mubr.bf16.mxu0 %v4072_v22 }
 0x3e7   :  { %1202 = vmatmul.mubr.bf16.gmra.mxu0 %v4073_v23 }
 0x42f   :  { %v2458_v25 = vpop.f32.mrf.mxu0 }
 0x431   :  { %v2459_v26 = vpop.f32.mrf.mxu0 }
 0x432   :  { %v2460_v27 = vadd.f32 %v2459_v26, %v2458_v25 }
 0x433   :  { %v2461_v29 = vpop.f32.mrf.mxu0 }
 0x434   :  { %v1084_v32 = vadd.f32 %v2460_v27, %v3577_v28 }
 0x435   :  { %v2462_v30 = vpop.f32.mrf.mxu0 }
 0x436   :  { %v2463_v33 = vadd.f32 %v2462_v30, %v2461_v29  ;;  %v1210_v41 = vmax.f32 %v1084_v32, 0.0 }
 0x437   :  { %v2464_v36 = vpop.f32.mrf.mxu0 }
 0x438   :  { %v1087_v37 = vadd.f32 %v2463_v33, %v3577_v28 }
 0x439   :  { %v2465_v40 = vpop.f32.mrf.mxu0 }
 0x43a   :  { %v1211_v44 = vmax.f32 %v1087_v37, 0.0  ;;  %v2466_v46 = vadd.f32 %v2465_v40, %v2464_v36 }
 0x43b   :  { %v2467_v48 = vpop.f32.mrf.mxu0 }
 0x43c   :  { %v1242_v8 = vpack.c.bf16 %v1211_v44, %v1210_v41  ;;  %v1092_v13 = vadd.f32 %v2466_v46, %v3577_v28 }
 0x43d   :  { %v2468_v11 = vpop.f32.mrf.mxu0 }
 0x43e   :  { %v2469_v34 = vadd.f32 %v2468_v11, %v2467_v48  ;;  %2938 = vmatprep.mubr.bf16.mxu1 %v1242_v8  ;;  %v1212_v53 = vmax.f32 %v1092_v13, 0.0 }
 0x43f   :  { %v2470_v38 = vpop.f32.mrf.mxu0 }
 0x440   :  { %v1095_v39 = vadd.f32 %v2469_v34, %v3577_v28 }
 0x441   :  { %v2471_v49 = vpop.f32.mrf.mxu0 }
 0x442   :  { %v1213_v50 = vmax.f32 %v1095_v39, 0.0  ;;  %v2472_v51 = vadd.f32 %v2471_v49, %v2470_v38 }
 0x443   :  { %v2473_v54 = vpop.f32.mrf.mxu0 }
 0x444   :  { %v1243_v24 = vpack.c.bf16 %v1213_v50, %v1212_v53  ;;  %v1100_v57 = vadd.f32 %v2472_v51, %v3577_v28 }
 0x445   :  { %v2474_v56 = vpop.f32.mrf.mxu0 }
 0x446   :  { %v2475_v58 = vadd.f32 %v2474_v56, %v2473_v54  ;;  %2939 = vmatmul.mubr.bf16.vlgmr.msra.gmra.mxu1 %v1243_v24  ;;  %v1214_v62 = vmax.f32 %v1100_v57, 0.0 }
 0x447   :  { %v2476_v59 = vpop.f32.mrf.mxu0 }
 0x448   :  { %v1103_v60 = vadd.f32 %v2475_v58, %v3577_v28 }
 0x449   :  { %v2477_v61 = vpop.f32.mrf.mxu0 }
 0x44a   :  { %v1215_v63 = vmax.f32 %v1103_v60, 0.0  ;;  %v2478_v0 = vadd.f32 %v2477_v61, %v2476_v59 }
 0x44b   :  { %v2479_v1 = vpop.f32.mrf.mxu0 }
 0x44c   :  { %v1244_v2 = vpack.c.bf16 %v1215_v63, %v1214_v62  ;;  %v1108_v5 = vadd.f32 %v2478_v0, %v3577_v28 }
 0x44d   :  { %v2480_v3 = vpop.f32.mrf.mxu0 }
 0x44e   :  { %v2481_v6 = vadd.f32 %v2480_v3, %v2479_v1  ;;  %2942 = vmatprep.mubr.bf16.mxu1 %v1244_v2  ;;  %v1216_v35 = vmax.f32 %v1108_v5, 0.0 }
 0x44f   :  { %v2482_v7 = vpop.f32.mrf.mxu0 }
 0x450   :  { %v1111_v10 = vadd.f32 %v2481_v6, %v3577_v28 }
 0x451   :  { %v2483_v31 = vpop.f32.mrf.mxu0 }
 0x452   :  { %v1217_v52 = vmax.f32 %v1111_v10, 0.0  ;;  %v2484_v55 = vadd.f32 %v2483_v31, %v2482_v7 }
 0x453   :  { %v2485_v4 = vpop.f32.mrf.mxu0 }
 0x454   :  { %v1245_v47 = vpack.c.bf16 %v1217_v52, %v1216_v35  ;;  %v1116_v43 = vadd.f32 %v2484_v55, %v3577_v28 }
 0x455   :  { %v2486_v45 = vpop.f32.mrf.mxu0 }
 0x456   :  { %v2487_v42 = vadd.f32 %v2486_v45, %v2485_v4  ;;  %2943 = vmatmul.mubr.bf16.gmra.mxu1 %v1245_v47  ;;  %v1218_v15 = vmax.f32 %v1116_v43, 0.0 }
 0x457   :  { %v2488_v9 = vpop.f32.mrf.mxu0 }
 0x458   :  { %v1119_v12 = vadd.f32 %v2487_v42, %v3577_v28 }
 0x459   :  { %v2489_v14 = vpop.f32.mrf.mxu0 }
 0x45a   :  { %v1219_v16 = vmax.f32 %v1119_v12, 0.0  ;;  %v2490_v17 = vadd.f32 %v2489_v14, %v2488_v9 }
 0x45b   :  { %v2491_v18 = vpop.f32.mrf.mxu0 }
 0x45c   :  { %v1246_v19 = vpack.c.bf16 %v1219_v16, %v1218_v15  ;;  %v1124_v21 = vadd.f32 %v2490_v17, %v3577_v28 }
 0x45d   :  { %v2492_v20 = vpop.f32.mrf.mxu0 }
 0x45e   :  { %v2493_v22 = vadd.f32 %v2492_v20, %v2491_v18  ;;  %2946 = vmatprep.mubr.bf16.mxu1 %v1246_v19  ;;  %v1220_v27 = vmax.f32 %v1124_v21, 0.0 }
 0x45f   :  { %v2494_v23 = vpop.f32.mrf.mxu0 }
 0x460   :  { %v1127_v25 = vadd.f32 %v2493_v22, %v3577_v28 }
 0x461   :  { %v2495_v26 = vpop.f32.mrf.mxu0 }
 0x462   :  { %v1221_v29 = vmax.f32 %v1127_v25, 0.0  ;;  %v2496_v30 = vadd.f32 %v2495_v26, %v2494_v23 }
 0x463   :  { %v2497_v32 = vpop.f32.mrf.mxu0 }
 0x464   :  { %v1247_v33 = vpack.c.bf16 %v1221_v29, %v1220_v27  ;;  %v1132_v37 = vadd.f32 %v2496_v30, %v3577_v28 }
 0x465   :  { %v2498_v36 = vpop.f32.mrf.mxu0 }
 0x466   :  { %v2499_v40 = vadd.f32 %v2498_v36, %v2497_v32  ;;  %2947 = vmatmul.mubr.bf16.gmra.mxu1 %v1247_v33  ;;  %v1222_v48 = vmax.f32 %v1132_v37, 0.0 }
 0x467   :  { %v2500_v41 = vpop.f32.mrf.mxu0 }
 0x468   :  { %v1135_v44 = vadd.f32 %v2499_v40, %v3577_v28 }
 0x469   :  { %v2501_v46 = vpop.f32.mrf.mxu0 }
 0x46a   :  { %v1223_v8 = vmax.f32 %v1135_v44, 0.0  ;;  %v2502_v11 = vadd.f32 %v2501_v46, %v2500_v41 }
 0x46b   :  { %v2503_v13 = vpop.f32.mrf.mxu0 }
 0x46c   :  { %v1248_v34 = vpack.c.bf16 %v1223_v8, %v1222_v48  ;;  %v1140_v39 = vadd.f32 %v2502_v11, %v3577_v28 }
 0x46d   :  { %v2504_v38 = vpop.f32.mrf.mxu0 }
 0x46e   :  { %v2505_v49 = vadd.f32 %v2504_v38, %v2503_v13  ;;  %2950 = vmatprep.mubr.bf16.mxu1 %v1248_v34  ;;  %v1224_v54 = vmax.f32 %v1140_v39, 0.0 }
 0x46f   :  { %v2506_v53 = vpop.f32.mrf.mxu0 }
 0x470   :  { %v1143_v50 = vadd.f32 %v2505_v49, %v3577_v28 }
 0x471   :  { %v2507_v51 = vpop.f32.mrf.mxu0 }
 0x472   :  { %v1225_v24 = vmax.f32 %v1143_v50, 0.0  ;;  %v2508_v56 = vadd.f32 %v2507_v51, %v2506_v53 }
 0x473   :  { %v2509_v57 = vpop.f32.mrf.mxu0 }
 0x474   :  { %v1249_v58 = vpack.c.bf16 %v1225_v24, %v1224_v54  ;;  %v1148_v60 = vadd.f32 %v2508_v56, %v3577_v28 }
 0x475   :  { %v2510_v59 = vpop.f32.mrf.mxu0 }
 0x476   :  { %v2511_v61 = vadd.f32 %v2510_v59, %v2509_v57  ;;  %2951 = vmatmul.mubr.bf16.gmra.mxu1 %v1249_v58  ;;  %v1226_v1 = vmax.f32 %v1148_v60, 0.0 }
 0x477   :  { %v2512_v62 = vpop.f32.mrf.mxu0 }
 0x478   :  { %v1151_v63 = vadd.f32 %v2511_v61, %v3577_v28 }
 0x479   :  { %v2513_v0 = vpop.f32.mrf.mxu0 }
 0x47a   :  { %v1227_v2 = vmax.f32 %v1151_v63, 0.0  ;;  %v2514_v3 = vadd.f32 %v2513_v0, %v2512_v62 }
 0x47b   :  { %v2515_v5 = vpop.f32.mrf.mxu0 }
 0x47c   :  { %v1250_v6 = vpack.c.bf16 %v1227_v2, %v1226_v1  ;;  %v1156_v10 = vadd.f32 %v2514_v3, %v3577_v28 }
 0x47d   :  { %v2516_v7 = vpop.f32.mrf.mxu0 }
 0x47e   :  { %v2517_v31 = vadd.f32 %v2516_v7, %v2515_v5  ;;  %2954 = vmatprep.mubr.bf16.mxu1 %v1250_v6  ;;  %v1228_v4 = vmax.f32 %v1156_v10, 0.0 }
 0x47f   :  { %v2518_v35 = vpop.f32.mrf.mxu0 }
 0x480   :  { %v1159_v52 = vadd.f32 %v2517_v31, %v3577_v28 }
 0x481   :  { %v2519_v55 = vpop.f32.mrf.mxu0 }
 0x482   :  { %v1229_v47 = vmax.f32 %v1159_v52, 0.0  ;;  %v2520_v45 = vadd.f32 %v2519_v55, %v2518_v35 }
 0x483   :  { %v2521_v43 = vpop.f32.mrf.mxu0 }
 0x484   :  { %v1251_v42 = vpack.c.bf16 %v1229_v47, %v1228_v4  ;;  %v1164_v12 = vadd.f32 %v2520_v45, %v3577_v28 }
 0x485   :  { %v2522_v9 = vpop.f32.mrf.mxu0 }
 0x486   :  { %v2523_v14 = vadd.f32 %v2522_v9, %v2521_v43  ;;  %2955 = vmatmul.mubr.bf16.gmra.mxu1 %v1251_v42  ;;  %v1230_v18 = vmax.f32 %v1164_v12, 0.0  ;;  %v3614_v42 = vld [vmem:[%s4043_s1 + $0x4] ss:$8 sps:$4 sm:$0xff]  }
 0x487   :  { %v2524_v15 = vpop.f32.mrf.mxu0 }
 0x488   :  { %v1167_v16 = vadd.f32 %v2523_v14, %v3577_v28 }
 0x489   :  { %v2525_v17 = vpop.f32.mrf.mxu0 }
 0x48a   :  { %v1231_v19 = vmax.f32 %v1167_v16, 0.0  ;;  %v2526_v20 = vadd.f32 %v2525_v17, %v2524_v15 }
 0x48b   :  { %v2527_v21 = vpop.f32.mrf.mxu0 }
 0x48c   :  { %v1252_v22 = vpack.c.bf16 %v1231_v19, %v1230_v18  ;;  %v1172_v25 = vadd.f32 %v2526_v20, %v3577_v28 }
 0x48d   :  { %v2528_v23 = vpop.f32.mrf.mxu0 }
 0x48e   :  { %v2529_v26 = vadd.f32 %v2528_v23, %v2527_v21  ;;  %2958 = vmatprep.mubr.bf16.mxu1 %v1252_v22  ;;  %v1232_v32 = vmax.f32 %v1172_v25, 0.0 }
 0x48f   :  { %v2530_v27 = vpop.f32.mrf.mxu0 }
 0x490   :  { %v1175_v29 = vadd.f32 %v2529_v26, %v3577_v28 }
 0x491   :  { %v2531_v30 = vpop.f32.mrf.mxu0 }
 0x492   :  { %v1233_v33 = vmax.f32 %v1175_v29, 0.0  ;;  %v2532_v36 = vadd.f32 %v2531_v30, %v2530_v27 }
 0x493   :  { %v2533_v37 = vpop.f32.mrf.mxu0 }
 0x494   :  { %v1253_v40 = vpack.c.bf16 %v1233_v33, %v1232_v32  ;;  %v1180_v44 = vadd.f32 %v2532_v36, %v3577_v28 }
 0x495   :  { %v2534_v41 = vpop.f32.mrf.mxu0 }
 0x496   :  { %v2535_v46 = vadd.f32 %v2534_v41, %v2533_v37  ;;  %2959 = vmatmul.mubr.bf16.gmra.mxu1 %v1253_v40  ;;  %v1234_v13 = vmax.f32 %v1180_v44, 0.0 }
 0x497   :  { %v2536_v48 = vpop.f32.mrf.mxu0 }
 0x498   :  { %v1183_v8 = vadd.f32 %v2535_v46, %v3577_v28 }
 0x499   :  { %v2537_v11 = vpop.f32.mrf.mxu0 }
 0x49a   :  { %v1235_v34 = vmax.f32 %v1183_v8, 0.0  ;;  %v2538_v38 = vadd.f32 %v2537_v11, %v2536_v48 }
 0x49b   :  { %v2539_v39 = vpop.f32.mrf.mxu0 }
 0x49c   :  { %v1254_v49 = vpack.c.bf16 %v1235_v34, %v1234_v13  ;;  %v1188_v50 = vadd.f32 %v2538_v38, %v3577_v28 }
 0x49d   :  { %v2540_v53 = vpop.f32.mrf.mxu0 }
 0x49e   :  { %v2541_v51 = vadd.f32 %v2540_v53, %v2539_v39  ;;  %2962 = vmatprep.mubr.bf16.mxu1 %v1254_v49  ;;  %v1236_v57 = vmax.f32 %v1188_v50, 0.0 }
 0x49f   :  { %v2542_v54 = vpop.f32.mrf.mxu0 }
 0x4a0   :  { %v1191_v24 = vadd.f32 %v2541_v51, %v3577_v28 }
 0x4a1   :  { %v2543_v56 = vpop.f32.mrf.mxu0 }
 0x4a2   :  { %v1237_v58 = vmax.f32 %v1191_v24, 0.0  ;;  %v2544_v59 = vadd.f32 %v2543_v56, %v2542_v54 }
 0x4a3   :  { %v2545_v60 = vpop.f32.mrf.mxu0 }
 0x4a4   :  { %v1255_v61 = vpack.c.bf16 %v1237_v58, %v1236_v57  ;;  %v1196_v63 = vadd.f32 %v2544_v59, %v3577_v28 }
 0x4a5   :  { %v2546_v62 = vpop.f32.mrf.mxu0 }
 0x4a6   :  { %v2547_v0 = vadd.f32 %v2546_v62, %v2545_v60  ;;  %2963 = vmatmul.mubr.bf16.gmra.mxu1 %v1255_v61  ;;  %v1238_v5 = vmax.f32 %v1196_v63, 0.0 }
 0x4a7   :  { %v2548_v1 = vpop.f32.mrf.mxu0 }
 0x4a8   :  { %v1199_v2 = vadd.f32 %v2547_v0, %v3577_v28 }
 0x4a9   :  { %v2549_v3 = vpop.f32.mrf.mxu0 }
 0x4aa   :  { %v1239_v6 = vmax.f32 %v1199_v2, 0.0  ;;  %v2550_v7 = vadd.f32 %v2549_v3, %v2548_v1  ;;  %v3106_v1 = vld [vmem:[%s4044_s4 + $0xb8] sm:$0xff]   ;;  %v3107_v2 = vld [vmem:[%s4044_s4 + $0xb0] sm:$0xff]   ;;  %v3108_v3 = vld [vmem:[%s4044_s4 + $0xa8] sm:$0xff]  }
 0x4ab   :  { %v2551_v10 = vpop.f32.mrf.mxu0  ;;  %2970 = vmatprep.subr.bf16.mxu0 %v3106_v1 }
 0x4ac   :  { %v1256_v31 = vpack.c.bf16 %v1239_v6, %v1238_v5  ;;  %v1204_v52 = vadd.f32 %v2550_v7, %v3577_v28  ;;  %2971 = vmatpush3.bf16.msra.mxu0 %v3106_v1  ;;  %v3641_v5 = vld [vmem:[%s4043_s1] ss:$8 sps:$4 sm:$0xff]   ;;  %v3647_v6 = vld [vmem:[%s4043_s1 + $0x14] ss:$8 sps:$4 sm:$0xff]   ;;  %v3653_v7 = vld [vmem:[%s4043_s1 + $0x10] ss:$8 sps:$4 sm:$0xff]  }
 0x4ad   :  { %v2552_v35 = vpop.f32.mrf.mxu0  ;;  %2972 = vmatprep.subr.bf16.mxu0 %v3107_v2 }
 0x4ae   :  { %v2553_v55 = vadd.f32 %v2552_v35, %v2551_v10  ;;  %2966 = vmatprep.mubr.bf16.mxu1 %v1256_v31  ;;  %v1240_v47 = vmax.f32 %v1204_v52, 0.0  ;;  %v3659_v10 = vld [vmem:[%s4043_s1 + $0x24] ss:$8 sps:$4 sm:$0xff]   ;;  %v3665_v31 = vld [vmem:[%s4043_s1 + $0x20] ss:$8 sps:$4 sm:$0xff]  }
 0x4af   :  { %v3671_v35 = vld [vmem:[%s4043_s1 + $0x34] ss:$8 sps:$4 sm:$0xff]   ;;  %v3677_v52 = vld [vmem:[%s4043_s1 + $0x30] ss:$8 sps:$4 sm:$0xff]  }
 0x4b0   :  { %v1207_v4 = vadd.f32 %v2553_v55, %v3577_v28  ;;  %2973 = vmatpush3.bf16.msra.mxu0 %v3107_v2  ;;  %v3683_v55 = vld [vmem:[%s4043_s1 + $0x44] ss:$8 sps:$4 sm:$0xff]  }
 0x4b1   :  { %2974 = vmatprep.subr.bf16.mxu0 %v3108_v3 }
 0x4b2   :  { %v1241_v45 = vmax.f32 %v1207_v4, 0.0  ;;  %v3689_v4 = vld [vmem:[%s4043_s1 + $0x40] ss:$8 sps:$4 sm:$0xff]  }
 0x4b4   :  { %v1257_v43 = vpack.c.bf16 %v1241_v45, %v1240_v47  ;;  %2975 = vmatpush3.bf16.msra.mxu0 %v3108_v3  ;;  %v3695_v47 = vld [vmem:[%s4043_s1 + $0x54] ss:$8 sps:$4 sm:$0xff]   ;;  %v3701_v45 = vld [vmem:[%s4043_s1 + $0x50] ss:$8 sps:$4 sm:$0xff]  }
 0x4b6   :  { %2967 = vmatmul.mubr.bf16.gmra.mxu1 %v1257_v43  ;;  %v3707_v43 = vld [vmem:[%s4043_s1 + $0x64] ss:$8 sps:$4 sm:$0xff]  }
 0x4b7   :  { %1540 = vmatprep.mubr.bf16.mxu1 %v3614_v42 }
 0x506   :  { %v3617_v9 = vpop.f32.mrf.mxu1 }
 0x508   :  { %v3619_v12 = vpop.f32.mrf.mxu1 }
 0x50a   :  { %v2941_v14 = vpop.f32.mrf.mxu1 }
 0x50b   :  { %v1487_v15 = vpack.c.bf16 %v2941_v14, %v3617_v9  ;;  %v3713_v9 = vld [vmem:[%s4043_s1 + $0x60] ss:$8 sps:$4 sm:$0xff]   ;;  %v3725_v14 = vld [vmem:[%s4043_s1 + $0x70] ss:$8 sps:$4 sm:$0xff]  }
 0x50c   :  { %v3622_v16 = vpop.f32.mrf.mxu1 }
 0x50d   :  { %v1486_v28 = vpack.c.bf16 %v3622_v16, %v3619_v12  ;;  %v3719_v12 = vld [vmem:[%s4043_s1 + $0x74] ss:$8 sps:$4 sm:$0xff]   ;;  %v3737_v16 = vld [vmem:[%s4043_s1 + $0x80] ss:$8 sps:$4 sm:$0xff]  }
 0x516   :  { %v2944_v17 = vpop.f32.mrf.mxu1 }
 0x518   :  { %v1375_v18 = vpop.f32.mrf.mxu1 }
 0x51a   :  { %v2945_v19 = vpop.f32.mrf.mxu1 }
 0x51b   :  { %v1489_v20 = vpack.c.bf16 %v2945_v19, %v2944_v17  ;;  %v3109_v17 = vld [vmem:[%s4044_s4 + $0xa0] sm:$0xff]   ;;  %v3755_v19 = vld [vmem:[%s4043_s1 + $0x90] ss:$8 sps:$4 sm:$0xff]  }
 0x51c   :  { %v1378_v21 = vpop.f32.mrf.mxu1  ;;  %2976 = vmatprep.subr.bf16.mxu0 %v3109_v17 }
 0x51d   :  { %v1488_v22 = vpack.c.bf16 %v1378_v21, %v1375_v18  ;;  %2977 = vmatpush3.bf16.msra.mxu0 %v3109_v17  ;;  %v3110_v18 = vld [vmem:[%s4044_s4 + $0x98] sm:$0xff]   ;;  %v3111_v21 = vld [vmem:[%s4044_s4 + $0x90] sm:$0xff]  }
 0x51e   :  { %2978 = vmatprep.subr.bf16.mxu0 %v3110_v18 }
 0x521   :  { %2979 = vmatpush3.bf16.msra.mxu0 %v3110_v18 }
 0x522   :  { %2980 = vmatprep.subr.bf16.mxu0 %v3111_v21 }
 0x525   :  { %2981 = vmatpush3.bf16.msra.mxu0 %v3111_v21 }
 0x526   :  { %v2948_v23 = vpop.f32.mrf.mxu1 }
 0x528   :  { %v1391_v25 = vpop.f32.mrf.mxu1 }
 0x52a   :  { %v2949_v26 = vpop.f32.mrf.mxu1 }
 0x52b   :  { %v1491_v58 = vpack.c.bf16 %v2949_v26, %v2948_v23  ;;  %v3773_v23 = vld [vmem:[%s4043_s1 + $0xa0] ss:$8 sps:$4 sm:$0xff]  }
 0x52c   :  { %v1394_v27 = vpop.f32.mrf.mxu1  ;;  %v3113_v26 = vld [vmem:[%s4044_s4 + $0x80] sm:$0xff]  }
 0x52d   :  { %v1490_v60 = vpack.c.bf16 %v1394_v27, %v1391_v25  ;;  %v3779_v25 = vld [vmem:[%s4043_s1 + $0xb4] ss:$8 sps:$4 sm:$0xff]   ;;  %v3788_v27 = vld [vmem:[%s4043_s1 + $0xb0] ss:$8 sps:$4 sm:$0xff]  }
 0x536   :  { %v2952_v29 = vpop.f32.mrf.mxu1 }
 0x538   :  { %v1407_v30 = vpop.f32.mrf.mxu1 }
 0x53a   :  { %v2953_v32 = vpop.f32.mrf.mxu1 }
 0x53b   :  { %v1493_v51 = vpack.c.bf16 %v2953_v32, %v2952_v29  ;;  %v3794_v29 = vld [vmem:[%s4043_s1 + $0xc4] ss:$8 sps:$4 sm:$0xff]   ;;  %v3806_v32 = vld [vmem:[%s4043_s1 + $0xd4] ss:$8 sps:$4 sm:$0xff]  }
 0x53c   :  { %v1410_v33 = vpop.f32.mrf.mxu1 }
 0x53d   :  { %v1492_v56 = vpack.c.bf16 %v1410_v33, %v1407_v30  ;;  %v3800_v30 = vld [vmem:[%s4043_s1 + $0xc0] ss:$8 sps:$4 sm:$0xff]   ;;  %v3812_v33 = vld [vmem:[%s4043_s1 + $0xd0] ss:$8 sps:$4 sm:$0xff]  }
 0x53e   :  { %4074 = vst [vmem:[#allocation2_spill] sm:$0xff] %v3812_v33 }
 0x546   :  { %v2956_v36 = vpop.f32.mrf.mxu1 }
 0x548   :  { %v1423_v37 = vpop.f32.mrf.mxu1 }
 0x54a   :  { %v2957_v40 = vpop.f32.mrf.mxu1 }
 0x54b   :  { %v1495_v63 = vpack.c.bf16 %v2957_v40, %v2956_v36  ;;  %v3818_v36 = vld [vmem:[%s4043_s1 + $0xe4] ss:$8 sps:$4 sm:$0xff]   ;;  %v3830_v40 = vld [vmem:[%s4043_s1 + $0xf4] ss:$8 sps:$4 sm:$0xff]  }
 0x54c   :  { %v1426_v41 = vpop.f32.mrf.mxu1  ;;  %4075 = vst [vmem:[#allocation3_spill] sm:$0xff] %v3818_v36  ;;  %4077 = vst [vmem:[#allocation5_spill] sm:$0xff] %v3830_v40 }
 0x54d   :  { %v1494_v0 = vpack.c.bf16 %v1426_v41, %v1423_v37  ;;  %v3824_v37 = vld [vmem:[%s4043_s1 + $0xe0] ss:$8 sps:$4 sm:$0xff]   ;;  %v3836_v41 = vld [vmem:[%s4043_s1 + $0xf0] ss:$8 sps:$4 sm:$0xff]  }
 0x54e   :  { %4076 = vst [vmem:[#allocation4_spill] sm:$0xff] %v3824_v37  ;;  %4078 = vst [vmem:[#allocation6_spill] sm:$0xff] %v3836_v41 }
 0x556   :  { %v2960_v44 = vpop.f32.mrf.mxu1 }
 0x558   :  { %v1439_v46 = vpop.f32.mrf.mxu1 }
 0x55a   :  { %v2961_v48 = vpop.f32.mrf.mxu1 }
 0x55b   :  { %v1497_v61 = vpack.c.bf16 %v2961_v48, %v2960_v44 }
 0x55c   :  { %v1442_v8 = vpop.f32.mrf.mxu1 }
 0x55d   :  { %v1496_v62 = vpack.c.bf16 %v1442_v8, %v1439_v46  ;;  %v3842_v8 = vld [vmem:[%s4046_s5 + $0x1] ss:$0 sm:$0xff] }
 0x566   :  { %v2964_v11 = vpop.f32.mrf.mxu1 }
 0x568   :  { %v1455_v13 = vpop.f32.mrf.mxu1 }
 0x56a   :  { %v2965_v34 = vpop.f32.mrf.mxu1 }
 0x56b   :  { %v1499_v57 = vpack.c.bf16 %v2965_v34, %v2964_v11 }
 0x56c   :  { %v1458_v38 = vpop.f32.mrf.mxu1 }
 0x56d   :  { %v1498_v59 = vpack.c.bf16 %v1458_v38, %v1455_v13 }
 0x576   :  { %v2968_v39 = vpop.f32.mrf.mxu1 }
 0x578   :  { %v1471_v49 = vpop.f32.mrf.mxu1 }
 0x57a   :  { %v2969_v53 = vpop.f32.mrf.mxu1 }
 0x57b   :  { %v1501_v50 = vpack.c.bf16 %v2969_v53, %v2968_v39 }
 0x57c   :  { %v1474_v54 = vpop.f32.mrf.mxu1 }
 0x57d   :  { %v1500_v24 = vpack.c.bf16 %v1474_v54, %v1471_v49  ;;  %2578 = vmatprep.subr.bf16.mxu1 %v1501_v50 }
 0x57e   :  { %2579 = vmatpush3.bf16.msra.mxu1 %v1493_v51 }
 0x57f   :  { %2580 = vmatprep.subr.bf16.mxu1 %v1500_v24 }
 0x582   :  { %2581 = vmatpush3.bf16.msra.mxu1 %v1492_v56 }
 0x583   :  { %2582 = vmatprep.subr.bf16.mxu1 %v1499_v57 }
 0x586   :  { %2583 = vmatpush3.bf16.msra.mxu1 %v1491_v58 }
 0x587   :  { %2584 = vmatprep.subr.bf16.mxu1 %v1498_v59 }
 0x58a   :  { %2585 = vmatpush3.bf16.msra.mxu1 %v1490_v60 }
 0x58b   :  { %2586 = vmatprep.subr.bf16.mxu1 %v1497_v61 }
 0x58e   :  { %2587 = vmatpush3.bf16.msra.mxu1 %v1489_v20  ;;  %v3761_v20 = vld [vmem:[%s4043_s1 + $0xa4] ss:$8 sps:$4 sm:$0xff]  }
 0x58f   :  { %2588 = vmatprep.subr.bf16.mxu1 %v1496_v62 }
 0x592   :  { %2589 = vmatpush3.bf16.msra.mxu1 %v1488_v22  ;;  %v3112_v22 = vld [vmem:[%s4044_s4 + $0x88] sm:$0xff]  }
 0x593   :  { %2590 = vmatprep.subr.bf16.mxu1 %v1495_v63  ;;  %2982 = vmatprep.subr.bf16.mxu0 %v3112_v22 }
 0x594   :  { %2983 = vmatpush3.bf16.msra.mxu0 %v3112_v22 }
 0x595   :  { %2984 = vmatprep.subr.bf16.mxu0 %v3113_v26 }
 0x596   :  { %2591 = vmatpush3.bf16.msra.mxu1 %v1487_v15  ;;  %v3731_v15 = vld [vmem:[%s4043_s1 + $0x84] ss:$8 sps:$4 sm:$0xff]  }
 0x597   :  { %2592 = vmatprep.subr.bf16.mxu1 %v1494_v0 }
 0x598   :  { %2985 = vmatpush3.bf16.msra.mxu0 %v3113_v26 }
 0x59a   :  { %2593 = vmatpush3.bf16.msra.mxu1 %v1486_v28  ;;  %v3743_v28 = vld [vmem:[%s4043_s1 + $0x94] ss:$8 sps:$4 sm:$0xff]  }
 0x59d   :  { %1541 = vmatmul.mubr.bf16.vlgmr.msra.gmra.mxu1 %v3641_v5 }
 0x59e   :  { %1548 = vmatprep.mubr.bf16.mxu1 %v3647_v6 }
 0x5a5   :  { %1549 = vmatmul.mubr.bf16.gmra.mxu1 %v3653_v7 }
 0x5a6   :  { %1556 = vmatprep.mubr.bf16.mxu1 %v3659_v10 }
 0x5ad   :  { %1557 = vmatmul.mubr.bf16.gmra.mxu1 %v3665_v31 }
 0x5ae   :  { %1564 = vmatprep.mubr.bf16.mxu1 %v3671_v35 }
 0x5b5   :  { %1565 = vmatmul.mubr.bf16.gmra.mxu1 %v3677_v52 }
 0x5b6   :  { %1572 = vmatprep.mubr.bf16.mxu1 %v3683_v55 }
 0x5bd   :  { %1573 = vmatmul.mubr.bf16.gmra.mxu1 %v3689_v4 }
 0x5be   :  { %1580 = vmatprep.mubr.bf16.mxu1 %v3695_v47 }
 0x5c5   :  { %1581 = vmatmul.mubr.bf16.gmra.mxu1 %v3701_v45 }
 0x5c6   :  { %1588 = vmatprep.mubr.bf16.mxu1 %v3707_v43 }
 0x5cd   :  { %1589 = vmatmul.mubr.bf16.gmra.mxu1 %v3713_v9 }
 0x5ce   :  { %1596 = vmatprep.mubr.bf16.mxu1 %v3719_v12 }
 0x5d5   :  { %1597 = vmatmul.mubr.bf16.gmra.mxu1 %v3725_v14 }
 0x5d6   :  { %1604 = vmatprep.mubr.bf16.mxu1 %v3731_v15 }
 0x5dd   :  { %1605 = vmatmul.mubr.bf16.gmra.mxu1 %v3737_v16 }
 0x5de   :  { %1612 = vmatprep.mubr.bf16.mxu1 %v3743_v28 }
 0x5e5   :  { %1613 = vmatmul.mubr.bf16.gmra.mxu1 %v3755_v19 }
 0x5e6   :  { %1620 = vmatprep.mubr.bf16.mxu1 %v3761_v20 }
 0x5ed   :  { %1621 = vmatmul.mubr.bf16.gmra.mxu1 %v3773_v23 }
 0x5ee   :  { %1628 = vmatprep.mubr.bf16.mxu1 %v3779_v25 }
 0x5f5   :  { %1629 = vmatmul.mubr.bf16.gmra.mxu1 %v3788_v27 }
 0x5f6   :  { %1636 = vmatprep.mubr.bf16.mxu1 %v3794_v29 }
 0x5fd   :  { %1637 = vmatmul.mubr.bf16.gmra.mxu1 %v3800_v30 }
 0x5fe   :  { %1644 = vmatprep.mubr.bf16.mxu1 %v3806_v32 }
 0x605   :  { %1645 = vmatmul.mubr.bf16.gmra.mxu1 %v3812_v33 }
 0x606   :  { %1652 = vmatprep.mubr.bf16.mxu1 %v3818_v36 }
 0x60d   :  { %1653 = vmatmul.mubr.bf16.gmra.mxu1 %v3824_v37 }
 0x60e   :  { %1660 = vmatprep.mubr.bf16.mxu1 %v3830_v40 }
 0x615   :  { %1661 = vmatmul.mubr.bf16.gmra.mxu1 %v3836_v41 }
 0x65d   :  { %v2594_v44 = vpop.f32.mrf.mxu1 }
 0x65f   :  { %v2595_v46 = vpop.f32.mrf.mxu1 }
 0x660   :  { %v2596_v48 = vadd.f32 %v2595_v46, %v2594_v44 }
 0x661   :  { %v2597_v11 = vpop.f32.mrf.mxu1 }
 0x662   :  { %v1543_v34 = vadd.f32 %v2596_v48, %v3842_v8 }
 0x663   :  { %v2598_v13 = vpop.f32.mrf.mxu1 }
 0x664   :  { %v2599_v38 = vadd.f32 %v2598_v13, %v2597_v11  ;;  %v1669_v50 = vmax.f32 %v1543_v34, 0.0 }
 0x665   :  { %v2600_v39 = vpop.f32.mrf.mxu1 }
 0x666   :  { %v1546_v49 = vadd.f32 %v2599_v38, %v3842_v8 }
 0x667   :  { %v2601_v53 = vpop.f32.mrf.mxu1 }
 0x668   :  { %v1670_v51 = vmax.f32 %v1546_v49, 0.0  ;;  %v2602_v54 = vadd.f32 %v2601_v53, %v2600_v39 }
 0x669   :  { %v2603_v24 = vpop.f32.mrf.mxu1 }
 0x66a   :  { %v1701_v56 = vpack.c.bf16 %v1670_v51, %v1669_v50  ;;  %v1551_v58 = vadd.f32 %v2602_v54, %v3842_v8 }
 0x66b   :  { %v2604_v57 = vpop.f32.mrf.mxu1 }
 0x66c   :  { %v2605_v59 = vadd.f32 %v2604_v57, %v2603_v24  ;;  %2986 = vmatprep.mubr.bf16.mxu0 %v1701_v56  ;;  %v1671_v63 = vmax.f32 %v1551_v58, 0.0 }
 0x66d   :  { %v2606_v60 = vpop.f32.mrf.mxu1 }
 0x66e   :  { %v1554_v61 = vadd.f32 %v2605_v59, %v3842_v8 }
 0x66f   :  { %v2607_v62 = vpop.f32.mrf.mxu1 }
 0x670   :  { %v1672_v0 = vmax.f32 %v1554_v61, 0.0  ;;  %v2608_v1 = vadd.f32 %v2607_v62, %v2606_v60 }
 0x671   :  { %v2609_v2 = vpop.f32.mrf.mxu1 }
 0x672   :  { %v1702_v3 = vpack.c.bf16 %v1672_v0, %v1671_v63  ;;  %v1559_v18 = vadd.f32 %v2608_v1, %v3842_v8 }
 0x673   :  { %v2610_v17 = vpop.f32.mrf.mxu1 }
 0x674   :  { %v2611_v21 = vadd.f32 %v2610_v17, %v2609_v2  ;;  %2987 = vmatmul.mubr.bf16.vlgmr.msra.gmra.mxu0 %v1702_v3  ;;  %v1673_v46 = vmax.f32 %v1559_v18, 0.0 }
 0x675   :  { %v2612_v22 = vpop.f32.mrf.mxu1 }
 0x676   :  { %v1562_v26 = vadd.f32 %v2611_v21, %v3842_v8 }
 0x677   :  { %v2613_v44 = vpop.f32.mrf.mxu1 }
 0x678   :  { %v1674_v48 = vmax.f32 %v1562_v26, 0.0  ;;  %v2614_v11 = vadd.f32 %v2613_v44, %v2612_v22 }
 0x679   :  { %v2615_v13 = vpop.f32.mrf.mxu1 }
 0x67a   :  { %v1703_v34 = vpack.c.bf16 %v1674_v48, %v1673_v46  ;;  %v1567_v39 = vadd.f32 %v2614_v11, %v3842_v8 }
 0x67b   :  { %v2616_v38 = vpop.f32.mrf.mxu1 }
 0x67c   :  { %v2617_v49 = vadd.f32 %v2616_v38, %v2615_v13  ;;  %2990 = vmatprep.mubr.bf16.mxu0 %v1703_v34  ;;  %v1675_v54 = vmax.f32 %v1567_v39, 0.0 }
 0x67d   :  { %v2618_v53 = vpop.f32.mrf.mxu1 }
 0x67e   :  { %v1570_v50 = vadd.f32 %v2617_v49, %v3842_v8 }
 0x67f   :  { %v2619_v51 = vpop.f32.mrf.mxu1 }
 0x680   :  { %v1676_v24 = vmax.f32 %v1570_v50, 0.0  ;;  %v2620_v56 = vadd.f32 %v2619_v51, %v2618_v53 }
 0x681   :  { %v2621_v57 = vpop.f32.mrf.mxu1 }
 0x682   :  { %v1704_v58 = vpack.c.bf16 %v1676_v24, %v1675_v54  ;;  %v1575_v60 = vadd.f32 %v2620_v56, %v3842_v8 }
 0x683   :  { %v2622_v59 = vpop.f32.mrf.mxu1 }
 0x684   :  { %v2623_v61 = vadd.f32 %v2622_v59, %v2621_v57  ;;  %2991 = vmatmul.mubr.bf16.gmra.mxu0 %v1704_v58  ;;  %v1677_v1 = vmax.f32 %v1575_v60, 0.0 }
 0x685   :  { %v2624_v62 = vpop.f32.mrf.mxu1 }
 0x686   :  { %v1578_v63 = vadd.f32 %v2623_v61, %v3842_v8 }
 0x687   :  { %v2625_v0 = vpop.f32.mrf.mxu1 }
 0x688   :  { %v1678_v2 = vmax.f32 %v1578_v63, 0.0  ;;  %v2626_v3 = vadd.f32 %v2625_v0, %v2624_v62 }
 0x689   :  { %v2627_v17 = vpop.f32.mrf.mxu1 }
 0x68a   :  { %v1705_v18 = vpack.c.bf16 %v1678_v2, %v1677_v1  ;;  %v1583_v22 = vadd.f32 %v2626_v3, %v3842_v8 }
 0x68b   :  { %v2628_v21 = vpop.f32.mrf.mxu1 }
 0x68c   :  { %v2629_v26 = vadd.f32 %v2628_v21, %v2627_v17  ;;  %2994 = vmatprep.mubr.bf16.mxu0 %v1705_v18  ;;  %v1679_v11 = vmax.f32 %v1583_v22, 0.0 }
 0x68d   :  { %v2630_v44 = vpop.f32.mrf.mxu1 }
 0x68e   :  { %v1586_v46 = vadd.f32 %v2629_v26, %v3842_v8 }
 0x68f   :  { %v2631_v48 = vpop.f32.mrf.mxu1 }
 0x690   :  { %v1680_v13 = vmax.f32 %v1586_v46, 0.0  ;;  %v2632_v34 = vadd.f32 %v2631_v48, %v2630_v44 }
 0x691   :  { %v2633_v38 = vpop.f32.mrf.mxu1 }
 0x692   :  { %v1706_v39 = vpack.c.bf16 %v1680_v13, %v1679_v11  ;;  %v1591_v53 = vadd.f32 %v2632_v34, %v3842_v8 }
 0x693   :  { %v2634_v49 = vpop.f32.mrf.mxu1 }
 0x694   :  { %v2635_v50 = vadd.f32 %v2634_v49, %v2633_v38  ;;  %2995 = vmatmul.mubr.bf16.gmra.mxu0 %v1706_v39  ;;  %v1681_v56 = vmax.f32 %v1591_v53, 0.0 }
 0x695   :  { %v2636_v51 = vpop.f32.mrf.mxu1 }
 0x696   :  { %v1594_v54 = vadd.f32 %v2635_v50, %v3842_v8 }
 0x697   :  { %v2637_v24 = vpop.f32.mrf.mxu1 }
 0x698   :  { %v1682_v57 = vmax.f32 %v1594_v54, 0.0  ;;  %v2638_v58 = vadd.f32 %v2637_v24, %v2636_v51 }
 0x699   :  { %v2639_v59 = vpop.f32.mrf.mxu1 }
 0x69a   :  { %v1707_v60 = vpack.c.bf16 %v1682_v57, %v1681_v56  ;;  %v1599_v62 = vadd.f32 %v2638_v58, %v3842_v8 }
 0x69b   :  { %v2640_v61 = vpop.f32.mrf.mxu1 }
 0x69c   :  { %v2641_v63 = vadd.f32 %v2640_v61, %v2639_v59  ;;  %2998 = vmatprep.mubr.bf16.mxu0 %v1707_v60  ;;  %v1683_v3 = vmax.f32 %v1599_v62, 0.0 }
 0x69d   :  { %v2642_v0 = vpop.f32.mrf.mxu1 }
 0x69e   :  { %v1602_v1 = vadd.f32 %v2641_v63, %v3842_v8 }
 0x69f   :  { %v2643_v2 = vpop.f32.mrf.mxu1 }
 0x6a0   :  { %v1684_v17 = vmax.f32 %v1602_v1, 0.0  ;;  %v2644_v18 = vadd.f32 %v2643_v2, %v2642_v0 }
 0x6a1   :  { %v2645_v21 = vpop.f32.mrf.mxu1 }
 0x6a2   :  { %v1708_v22 = vpack.c.bf16 %v1684_v17, %v1683_v3  ;;  %v1607_v44 = vadd.f32 %v2644_v18, %v3842_v8 }
 0x6a3   :  { %v2646_v26 = vpop.f32.mrf.mxu1 }
 0x6a4   :  { %v2647_v46 = vadd.f32 %v2646_v26, %v2645_v21  ;;  %2999 = vmatmul.mubr.bf16.gmra.mxu0 %v1708_v22  ;;  %v1685_v34 = vmax.f32 %v1607_v44, 0.0 }
 0x6a5   :  { %v2648_v48 = vpop.f32.mrf.mxu1 }
 0x6a6   :  { %v1610_v11 = vadd.f32 %v2647_v46, %v3842_v8 }
 0x6a7   :  { %v2649_v13 = vpop.f32.mrf.mxu1 }
 0x6a8   :  { %v1686_v38 = vmax.f32 %v1610_v11, 0.0  ;;  %v2650_v39 = vadd.f32 %v2649_v13, %v2648_v48 }
 0x6a9   :  { %v2651_v49 = vpop.f32.mrf.mxu1 }
 0x6aa   :  { %v1709_v53 = vpack.c.bf16 %v1686_v38, %v1685_v34  ;;  %v1615_v51 = vadd.f32 %v2650_v39, %v3842_v8 }
 0x6ab   :  { %v2652_v50 = vpop.f32.mrf.mxu1 }
 0x6ac   :  { %v2653_v54 = vadd.f32 %v2652_v50, %v2651_v49  ;;  %3002 = vmatprep.mubr.bf16.mxu0 %v1709_v53  ;;  %v1687_v58 = vmax.f32 %v1615_v51, 0.0 }
 0x6ad   :  { %v2654_v24 = vpop.f32.mrf.mxu1 }
 0x6ae   :  { %v1618_v56 = vadd.f32 %v2653_v54, %v3842_v8 }
 0x6af   :  { %v2655_v57 = vpop.f32.mrf.mxu1 }
 0x6b0   :  { %v1688_v59 = vmax.f32 %v1618_v56, 0.0  ;;  %v2656_v60 = vadd.f32 %v2655_v57, %v2654_v24 }
 0x6b1   :  { %v2657_v61 = vpop.f32.mrf.mxu1 }
 0x6b2   :  { %v1710_v62 = vpack.c.bf16 %v1688_v59, %v1687_v58  ;;  %v1623_v0 = vadd.f32 %v2656_v60, %v3842_v8 }
 0x6b3   :  { %v2658_v63 = vpop.f32.mrf.mxu1 }
 0x6b4   :  { %v2659_v1 = vadd.f32 %v2658_v63, %v2657_v61  ;;  %3003 = vmatmul.mubr.bf16.gmra.mxu0 %v1710_v62  ;;  %v1689_v18 = vmax.f32 %v1623_v0, 0.0 }
 0x6b5   :  { %v2660_v2 = vpop.f32.mrf.mxu1 }
 0x6b6   :  { %v1626_v3 = vadd.f32 %v2659_v1, %v3842_v8 }
 0x6b7   :  { %v2661_v17 = vpop.f32.mrf.mxu1 }
 0x6b8   :  { %v1690_v21 = vmax.f32 %v1626_v3, 0.0  ;;  %v2662_v22 = vadd.f32 %v2661_v17, %v2660_v2 }
 0x6b9   :  { %v2663_v26 = vpop.f32.mrf.mxu1 }
 0x6ba   :  { %v1711_v44 = vpack.c.bf16 %v1690_v21, %v1689_v18  ;;  %v1631_v48 = vadd.f32 %v2662_v22, %v3842_v8 }
 0x6bb   :  { %v2664_v46 = vpop.f32.mrf.mxu1 }
 0x6bc   :  { %v2665_v11 = vadd.f32 %v2664_v46, %v2663_v26  ;;  %3006 = vmatprep.mubr.bf16.mxu0 %v1711_v44  ;;  %v1691_v39 = vmax.f32 %v1631_v48, 0.0 }
 0x6bd   :  { %v2666_v13 = vpop.f32.mrf.mxu1 }
 0x6be   :  { %v1634_v34 = vadd.f32 %v2665_v11, %v3842_v8 }
 0x6bf   :  { %v2667_v38 = vpop.f32.mrf.mxu1 }
 0x6c0   :  { %v1692_v49 = vmax.f32 %v1634_v34, 0.0  ;;  %v2668_v53 = vadd.f32 %v2667_v38, %v2666_v13 }
 0x6c1   :  { %v2669_v50 = vpop.f32.mrf.mxu1 }
 0x6c2   :  { %v1712_v51 = vpack.c.bf16 %v1692_v49, %v1691_v39  ;;  %v1639_v24 = vadd.f32 %v2668_v53, %v3842_v8 }
 0x6c3   :  { %v2670_v54 = vpop.f32.mrf.mxu1 }
 0x6c4   :  { %v2671_v56 = vadd.f32 %v2670_v54, %v2669_v50  ;;  %3007 = vmatmul.mubr.bf16.gmra.mxu0 %v1712_v51  ;;  %v1693_v60 = vmax.f32 %v1639_v24, 0.0 }
 0x6c5   :  { %v2672_v57 = vpop.f32.mrf.mxu1 }
 0x6c6   :  { %v1642_v58 = vadd.f32 %v2671_v56, %v3842_v8 }
 0x6c7   :  { %v2673_v59 = vpop.f32.mrf.mxu1 }
 0x6c8   :  { %v1694_v61 = vmax.f32 %v1642_v58, 0.0  ;;  %v2674_v62 = vadd.f32 %v2673_v59, %v2672_v57 }
 0x6c9   :  { %v2675_v63 = vpop.f32.mrf.mxu1 }
 0x6ca   :  { %v1713_v0 = vpack.c.bf16 %v1694_v61, %v1693_v60  ;;  %v1647_v2 = vadd.f32 %v2674_v62, %v3842_v8 }
 0x6cb   :  { %v2676_v1 = vpop.f32.mrf.mxu1 }
 0x6cc   :  { %v2677_v3 = vadd.f32 %v2676_v1, %v2675_v63  ;;  %3010 = vmatprep.mubr.bf16.mxu0 %v1713_v0  ;;  %v1695_v22 = vmax.f32 %v1647_v2, 0.0 }
 0x6cd   :  { %v2678_v17 = vpop.f32.mrf.mxu1 }
 0x6ce   :  { %v1650_v18 = vadd.f32 %v2677_v3, %v3842_v8 }
 0x6cf   :  { %v2679_v21 = vpop.f32.mrf.mxu1 }
 0x6d0   :  { %v1696_v26 = vmax.f32 %v1650_v18, 0.0  ;;  %v2680_v44 = vadd.f32 %v2679_v21, %v2678_v17 }
 0x6d1   :  { %v2681_v46 = vpop.f32.mrf.mxu1 }
 0x6d2   :  { %v1714_v48 = vpack.c.bf16 %v1696_v26, %v1695_v22  ;;  %v1655_v13 = vadd.f32 %v2680_v44, %v3842_v8 }
 0x6d3   :  { %v2682_v11 = vpop.f32.mrf.mxu1 }
 0x6d4   :  { %v2683_v34 = vadd.f32 %v2682_v11, %v2681_v46  ;;  %3011 = vmatmul.mubr.bf16.gmra.mxu0 %v1714_v48  ;;  %v1697_v53 = vmax.f32 %v1655_v13, 0.0 }
 0x6d5   :  { %v2684_v38 = vpop.f32.mrf.mxu1 }
 0x6d6   :  { %v1658_v39 = vadd.f32 %v2683_v34, %v3842_v8 }
 0x6d7   :  { %v2685_v49 = vpop.f32.mrf.mxu1 }
 0x6d8   :  { %v1698_v50 = vmax.f32 %v1658_v39, 0.0  ;;  %v2686_v51 = vadd.f32 %v2685_v49, %v2684_v38 }
 0x6d9   :  { %v2687_v54 = vpop.f32.mrf.mxu1 }
 0x6da   :  { %v1715_v24 = vpack.c.bf16 %v1698_v50, %v1697_v53  ;;  %v1663_v57 = vadd.f32 %v2686_v51, %v3842_v8 }
 0x6db   :  { %v2688_v56 = vpop.f32.mrf.mxu1 }
 0x6dc   :  { %v2689_v58 = vadd.f32 %v2688_v56, %v2687_v54  ;;  %3014 = vmatprep.mubr.bf16.mxu0 %v1715_v24  ;;  %v1699_v60 = vmax.f32 %v1663_v57, 0.0 }
 0x6de   :  { %v1666_v59 = vadd.f32 %v2689_v58, %v3842_v8 }
 0x6e0   :  { %v1700_v61 = vmax.f32 %v1666_v59, 0.0 }
 0x6e2   :  { %v1716_v62 = vpack.c.bf16 %v1700_v61, %v1699_v60 }
 0x6e4   :  { %3015 = vmatmul.mubr.bf16.gmra.mxu0 %v1716_v62 }
 0x6e5   :  { %1999 = vmatprep.mubr.bf16.mxu0 %v3614_v42 }
 0x734   :  { %v2988_v63 = vpop.f32.mrf.mxu0 }
 0x736   :  { %v1818_v0 = vpop.f32.mrf.mxu0 }
 0x738   :  { %v2989_v1 = vpop.f32.mrf.mxu0 }
 0x739   :  { %v1946_v2 = vpack.c.bf16 %v2989_v1, %v2988_v63 }
 0x73a   :  { %v1821_v3 = vpop.f32.mrf.mxu0 }
 0x73b   :  { %v1945_v17 = vpack.c.bf16 %v1821_v3, %v1818_v0 }
 0x744   :  { %v2992_v18 = vpop.f32.mrf.mxu0 }
 0x746   :  { %v1834_v21 = vpop.f32.mrf.mxu0 }
 0x748   :  { %v2993_v22 = vpop.f32.mrf.mxu0 }
 0x749   :  { %v1948_v26 = vpack.c.bf16 %v2993_v22, %v2992_v18 }
 0x74a   :  { %v1837_v44 = vpop.f32.mrf.mxu0 }
 0x74b   :  { %v1947_v46 = vpack.c.bf16 %v1837_v44, %v1834_v21 }
 0x754   :  { %v2996_v48 = vpop.f32.mrf.mxu0 }
 0x756   :  { %v1850_v8 = vpop.f32.mrf.mxu0 }
 0x758   :  { %v2997_v11 = vpop.f32.mrf.mxu0 }
 0x759   :  { %v1950_v41 = vpack.c.bf16 %v2997_v11, %v2996_v48 }
 0x75a   :  { %v1853_v13 = vpop.f32.mrf.mxu0 }
 0x75b   :  { %v1949_v37 = vpack.c.bf16 %v1853_v13, %v1850_v8 }
 0x764   :  { %v3000_v34 = vpop.f32.mrf.mxu0 }
 0x766   :  { %v1866_v38 = vpop.f32.mrf.mxu0 }
 0x768   :  { %v3001_v39 = vpop.f32.mrf.mxu0 }
 0x769   :  { %v1952_v3 = vpack.c.bf16 %v3001_v39, %v3000_v34 }
 0x76a   :  { %v1869_v42 = vpop.f32.mrf.mxu0 }
 0x76b   :  { %v1951_v22 = vpack.c.bf16 %v1869_v42, %v1866_v38 }
 0x774   :  { %v3004_v49 = vpop.f32.mrf.mxu0 }
 0x776   :  { %v1882_v53 = vpop.f32.mrf.mxu0 }
 0x778   :  { %v3005_v50 = vpop.f32.mrf.mxu0 }
 0x779   :  { %v1954_v34 = vpack.c.bf16 %v3005_v50, %v3004_v49 }
 0x77a   :  { %v1885_v51 = vpop.f32.mrf.mxu0 }
 0x77b   :  { %v1953_v39 = vpack.c.bf16 %v1885_v51, %v1882_v53 }
 0x784   :  { %v3008_v54 = vpop.f32.mrf.mxu0 }
 0x786   :  { %v1898_v24 = vpop.f32.mrf.mxu0 }
 0x788   :  { %v3009_v56 = vpop.f32.mrf.mxu0 }
 0x789   :  { %v1956_v36 = vpack.c.bf16 %v3009_v56, %v3008_v54 }
 0x78a   :  { %v1901_v57 = vpop.f32.mrf.mxu0 }
 0x78b   :  { %v1955_v33 = vpack.c.bf16 %v1901_v57, %v1898_v24 }
 0x794   :  { %v3012_v58 = vpop.f32.mrf.mxu0 }
 0x796   :  { %v1914_v59 = vpop.f32.mrf.mxu0 }
 0x798   :  { %v3013_v60 = vpop.f32.mrf.mxu0 }
 0x799   :  { %v1958_v44 = vpack.c.bf16 %v3013_v60, %v3012_v58 }
 0x79a   :  { %v1917_v61 = vpop.f32.mrf.mxu0 }
 0x79b   :  { %v1957_v40 = vpack.c.bf16 %v1917_v61, %v1914_v59 }
 0x7a4   :  { %v3016_v62 = vpop.f32.mrf.mxu0 }
 0x7a6   :  { %v1930_v63 = vpop.f32.mrf.mxu0 }
 0x7a8   :  { %v3017_v0 = vpop.f32.mrf.mxu0 }
 0x7a9   :  { %v1960_v1 = vpack.c.bf16 %v3017_v0, %v3016_v62 }
 0x7aa   :  { %v1933_v18 = vpop.f32.mrf.mxu0 }
 0x7ab   :  { %v1959_v21 = vpack.c.bf16 %v1933_v18, %v1930_v63  ;;  %2714 = vmatprep.subr.bf16.mxu0 %v1960_v1 }
 0x7ac   :  { %2715 = vmatpush3.bf16.msra.mxu0 %v1952_v3 }
 0x7ad   :  { %2716 = vmatprep.subr.bf16.mxu0 %v1959_v21 }
 0x7b0   :  { %2717 = vmatpush3.bf16.msra.mxu0 %v1951_v22 }
 0x7b1   :  { %2718 = vmatprep.subr.bf16.mxu0 %v1958_v44 }
 0x7b4   :  { %2719 = vmatpush3.bf16.msra.mxu0 %v1950_v41 }
 0x7b5   :  { %2720 = vmatprep.subr.bf16.mxu0 %v1957_v40 }
 0x7b8   :  { %2721 = vmatpush3.bf16.msra.mxu0 %v1949_v37 }
 0x7b9   :  { %2722 = vmatprep.subr.bf16.mxu0 %v1956_v36 }
 0x7bc   :  { %2723 = vmatpush3.bf16.msra.mxu0 %v1948_v26 }
 0x7bd   :  { %2724 = vmatprep.subr.bf16.mxu0 %v1955_v33 }
 0x7c0   :  { %2725 = vmatpush3.bf16.msra.mxu0 %v1947_v46 }
 0x7c1   :  { %2726 = vmatprep.subr.bf16.mxu0 %v1954_v34 }
 0x7c4   :  { %2727 = vmatpush3.bf16.msra.mxu0 %v1946_v2 }
 0x7c5   :  { %2728 = vmatprep.subr.bf16.mxu0 %v1953_v39 }
 0x7c8   :  { %2729 = vmatpush3.bf16.msra.mxu0 %v1945_v17 }
 0x7cb   :  { %2000 = vmatmul.mubr.bf16.vlgmr.msra.gmra.mxu0 %v3641_v5  ;;  %v4079_v5 = vld [vmem:[#allocation2_spill] sm:$0xff] }
 0x7cc   :  { %2007 = vmatprep.mubr.bf16.mxu0 %v3647_v6  ;;  %v4080_v6 = vld [vmem:[#allocation3_spill] sm:$0xff] }
 0x7d3   :  { %2008 = vmatmul.mubr.bf16.gmra.mxu0 %v3653_v7  ;;  %v4081_v7 = vld [vmem:[#allocation4_spill] sm:$0xff] }
 0x7d4   :  { %2015 = vmatprep.mubr.bf16.mxu0 %v3659_v10  ;;  %v4082_v10 = vld [vmem:[#allocation5_spill] sm:$0xff] }
 0x7db   :  { %2016 = vmatmul.mubr.bf16.gmra.mxu0 %v3665_v31  ;;  %v4083_v31 = vld [vmem:[#allocation6_spill] sm:$0xff] }
 0x7dc   :  { %2023 = vmatprep.mubr.bf16.mxu0 %v3671_v35 }
 0x7e3   :  { %2024 = vmatmul.mubr.bf16.gmra.mxu0 %v3677_v52  ;;  %v3911_v52 = vld [vmem:[%s4046_s5 + $0x2] ss:$0 sm:$0xff] }
 0x7e4   :  { %2031 = vmatprep.mubr.bf16.mxu0 %v3683_v55 }
 0x7eb   :  { %2032 = vmatmul.mubr.bf16.gmra.mxu0 %v3689_v4 }
 0x7ec   :  { %2039 = vmatprep.mubr.bf16.mxu0 %v3695_v47 }
 0x7f3   :  { %2040 = vmatmul.mubr.bf16.gmra.mxu0 %v3701_v45 }
 0x7f4   :  { %2047 = vmatprep.mubr.bf16.mxu0 %v3707_v43 }
 0x7fb   :  { %2048 = vmatmul.mubr.bf16.gmra.mxu0 %v3713_v9 }
 0x7fc   :  { %2055 = vmatprep.mubr.bf16.mxu0 %v3719_v12 }
 0x803   :  { %2056 = vmatmul.mubr.bf16.gmra.mxu0 %v3725_v14 }
 0x804   :  { %2063 = vmatprep.mubr.bf16.mxu0 %v3731_v15 }
 0x80b   :  { %2064 = vmatmul.mubr.bf16.gmra.mxu0 %v3737_v16 }
 0x80c   :  { %2071 = vmatprep.mubr.bf16.mxu0 %v3743_v28 }
 0x813   :  { %2072 = vmatmul.mubr.bf16.gmra.mxu0 %v3755_v19 }
 0x814   :  { %2079 = vmatprep.mubr.bf16.mxu0 %v3761_v20 }
 0x81b   :  { %2080 = vmatmul.mubr.bf16.gmra.mxu0 %v3773_v23 }
 0x81c   :  { %2087 = vmatprep.mubr.bf16.mxu0 %v3779_v25 }
 0x823   :  { %2088 = vmatmul.mubr.bf16.gmra.mxu0 %v3788_v27 }
 0x824   :  { %2095 = vmatprep.mubr.bf16.mxu0 %v3794_v29 }
 0x82b   :  { %2096 = vmatmul.mubr.bf16.gmra.mxu0 %v3800_v30 }
 0x82c   :  { %2103 = vmatprep.mubr.bf16.mxu0 %v3806_v32 }
 0x833   :  { %2104 = vmatmul.mubr.bf16.gmra.mxu0 %v4079_v5 }
 0x834   :  { %2111 = vmatprep.mubr.bf16.mxu0 %v4080_v6 }
 0x83b   :  { %2112 = vmatmul.mubr.bf16.gmra.mxu0 %v4081_v7 }
 0x83c   :  { %2119 = vmatprep.mubr.bf16.mxu0 %v4082_v10 }
 0x843   :  { %2120 = vmatmul.mubr.bf16.gmra.mxu0 %v4083_v31 }
 0x88b   :  { %v2730_v35 = vpop.f32.mrf.mxu0 }
 0x88d   :  { %v2731_v55 = vpop.f32.mrf.mxu0 }
 0x88e   :  { %v2732_v4 = vadd.f32 %v2731_v55, %v2730_v35 }
 0x88f   :  { %v2733_v47 = vpop.f32.mrf.mxu0 }
 0x890   :  { %v2002_v45 = vadd.f32 %v2732_v4, %v3911_v52 }
 0x891   :  { %v2734_v43 = vpop.f32.mrf.mxu0 }
 0x892   :  { %2128 = vst [vmem:[%s4047_s6] sm:$0xff] %v2002_v45  ;;  %v2735_v9 = vadd.f32 %v2734_v43, %v2733_v47 }
 0x893   :  { %v2736_v12 = vpop.f32.mrf.mxu0 }
 0x894   :  { %v2005_v14 = vadd.f32 %v2735_v9, %v3911_v52 }
 0x895   :  { %v2737_v15 = vpop.f32.mrf.mxu0 }
 0x896   :  { %2129 = vst [vmem:[%s4047_s6 + $0x8] sm:$0xff] %v2005_v14  ;;  %v2738_v16 = vadd.f32 %v2737_v15, %v2736_v12 }
 0x897   :  { %v2739_v28 = vpop.f32.mrf.mxu0 }
 0x898   :  { %v2010_v19 = vadd.f32 %v2738_v16, %v3911_v52 }
 0x899   :  { %v2740_v20 = vpop.f32.mrf.mxu0 }
 0x89a   :  { %2130 = vst [vmem:[%s4047_s6 + $0x10] sm:$0xff] %v2010_v19  ;;  %v2741_v23 = vadd.f32 %v2740_v20, %v2739_v28 }
 0x89b   :  { %v2742_v25 = vpop.f32.mrf.mxu0 }
 0x89c   :  { %v2013_v27 = vadd.f32 %v2741_v23, %v3911_v52 }
 0x89d   :  { %v2743_v29 = vpop.f32.mrf.mxu0 }
 0x89e   :  { %2131 = vst [vmem:[%s4047_s6 + $0x18] sm:$0xff] %v2013_v27  ;;  %v2744_v30 = vadd.f32 %v2743_v29, %v2742_v25 }
 0x89f   :  { %v2745_v32 = vpop.f32.mrf.mxu0 }
 0x8a0   :  { %v2018_v33 = vadd.f32 %v2744_v30, %v3911_v52 }
 0x8a1   :  { %v2746_v36 = vpop.f32.mrf.mxu0 }
 0x8a2   :  { %2132 = vst [vmem:[%s4047_s6 + $0x20] sm:$0xff] %v2018_v33  ;;  %v2747_v37 = vadd.f32 %v2746_v36, %v2745_v32 }
 0x8a3   :  { %v2748_v40 = vpop.f32.mrf.mxu0 }
 0x8a4   :  { %v2021_v41 = vadd.f32 %v2747_v37, %v3911_v52 }
 0x8a5   :  { %v2749_v2 = vpop.f32.mrf.mxu0 }
 0x8a6   :  { %2133 = vst [vmem:[%s4047_s6 + $0x28] sm:$0xff] %v2021_v41  ;;  %v2750_v17 = vadd.f32 %v2749_v2, %v2748_v40 }
 0x8a7   :  { %v2751_v26 = vpop.f32.mrf.mxu0 }
 0x8a8   :  { %v2026_v46 = vadd.f32 %v2750_v17, %v3911_v52 }
 0x8a9   :  { %v2752_v48 = vpop.f32.mrf.mxu0 }
 0x8aa   :  { %2134 = vst [vmem:[%s4047_s6 + $0x30] sm:$0xff] %v2026_v46  ;;  %v2753_v8 = vadd.f32 %v2752_v48, %v2751_v26 }
 0x8ab   :  { %v2754_v11 = vpop.f32.mrf.mxu0 }
 0x8ac   :  { %v2029_v13 = vadd.f32 %v2753_v8, %v3911_v52 }
 0x8ad   :  { %v2755_v38 = vpop.f32.mrf.mxu0 }
 0x8ae   :  { %2135 = vst [vmem:[%s4047_s6 + $0x38] sm:$0xff] %v2029_v13  ;;  %v2756_v42 = vadd.f32 %v2755_v38, %v2754_v11 }
 0x8af   :  { %v2757_v49 = vpop.f32.mrf.mxu0 }
 0x8b0   :  { %v2034_v53 = vadd.f32 %v2756_v42, %v3911_v52 }
 0x8b1   :  { %v2758_v50 = vpop.f32.mrf.mxu0 }
 0x8b2   :  { %2136 = vst [vmem:[%s4047_s6 + $0x40] sm:$0xff] %v2034_v53  ;;  %v2759_v51 = vadd.f32 %v2758_v50, %v2757_v49 }
 0x8b3   :  { %v2760_v54 = vpop.f32.mrf.mxu0 }
 0x8b4   :  { %v2037_v24 = vadd.f32 %v2759_v51, %v3911_v52 }
 0x8b5   :  { %v2761_v56 = vpop.f32.mrf.mxu0 }
 0x8b6   :  { %2137 = vst [vmem:[%s4047_s6 + $0x48] sm:$0xff] %v2037_v24  ;;  %v2762_v57 = vadd.f32 %v2761_v56, %v2760_v54 }
 0x8b7   :  { %v2763_v58 = vpop.f32.mrf.mxu0 }
 0x8b8   :  { %v2042_v59 = vadd.f32 %v2762_v57, %v3911_v52 }
 0x8b9   :  { %v2764_v60 = vpop.f32.mrf.mxu0 }
 0x8ba   :  { %2138 = vst [vmem:[%s4047_s6 + $0x50] sm:$0xff] %v2042_v59  ;;  %v2765_v61 = vadd.f32 %v2764_v60, %v2763_v58 }
 0x8bb   :  { %v2766_v62 = vpop.f32.mrf.mxu0 }
 0x8bc   :  { %v2045_v63 = vadd.f32 %v2765_v61, %v3911_v52 }
 0x8bd   :  { %v2767_v0 = vpop.f32.mrf.mxu0 }
 0x8be   :  { %2139 = vst [vmem:[%s4047_s6 + $0x58] sm:$0xff] %v2045_v63  ;;  %v2768_v1 = vadd.f32 %v2767_v0, %v2766_v62 }
 0x8bf   :  { %v2769_v3 = vpop.f32.mrf.mxu0 }
 0x8c0   :  { %v2050_v18 = vadd.f32 %v2768_v1, %v3911_v52 }
 0x8c1   :  { %v2770_v21 = vpop.f32.mrf.mxu0 }
 0x8c2   :  { %2140 = vst [vmem:[%s4047_s6 + $0x60] sm:$0xff] %v2050_v18  ;;  %v2771_v22 = vadd.f32 %v2770_v21, %v2769_v3 }
 0x8c3   :  { %v2772_v44 = vpop.f32.mrf.mxu0 }
 0x8c4   :  { %v2053_v34 = vadd.f32 %v2771_v22, %v3911_v52 }
 0x8c5   :  { %v2773_v39 = vpop.f32.mrf.mxu0 }
 0x8c6   :  { %2141 = vst [vmem:[%s4047_s6 + $0x68] sm:$0xff] %v2053_v34  ;;  %v2774_v5 = vadd.f32 %v2773_v39, %v2772_v44 }
 0x8c7   :  { %v2775_v6 = vpop.f32.mrf.mxu0 }
 0x8c8   :  { %v2058_v7 = vadd.f32 %v2774_v5, %v3911_v52 }
 0x8c9   :  { %v2776_v10 = vpop.f32.mrf.mxu0 }
 0x8ca   :  { %2142 = vst [vmem:[%s4047_s6 + $0x70] sm:$0xff] %v2058_v7  ;;  %v2777_v31 = vadd.f32 %v2776_v10, %v2775_v6 }
 0x8cb   :  { %v2778_v35 = vpop.f32.mrf.mxu0 }
 0x8cc   :  { %v2061_v55 = vadd.f32 %v2777_v31, %v3911_v52 }
 0x8cd   :  { %v2779_v4 = vpop.f32.mrf.mxu0 }
 0x8ce   :  { %2143 = vst [vmem:[%s4047_s6 + $0x78] sm:$0xff] %v2061_v55  ;;  %v2780_v47 = vadd.f32 %v2779_v4, %v2778_v35 }
 0x8cf   :  { %v2781_v45 = vpop.f32.mrf.mxu0 }
 0x8d0   :  { %v2066_v43 = vadd.f32 %v2780_v47, %v3911_v52 }
 0x8d1   :  { %v2782_v9 = vpop.f32.mrf.mxu0 }
 0x8d2   :  { %2144 = vst [vmem:[%s4047_s6 + $0x80] sm:$0xff] %v2066_v43  ;;  %v2783_v12 = vadd.f32 %v2782_v9, %v2781_v45 }
 0x8d3   :  { %v2784_v14 = vpop.f32.mrf.mxu0 }
 0x8d4   :  { %v2069_v15 = vadd.f32 %v2783_v12, %v3911_v52 }
 0x8d5   :  { %v2785_v16 = vpop.f32.mrf.mxu0 }
 0x8d6   :  { %2145 = vst [vmem:[%s4047_s6 + $0x88] sm:$0xff] %v2069_v15  ;;  %v2786_v28 = vadd.f32 %v2785_v16, %v2784_v14 }
 0x8d7   :  { %v2787_v19 = vpop.f32.mrf.mxu0 }
 0x8d8   :  { %v2074_v20 = vadd.f32 %v2786_v28, %v3911_v52 }
 0x8d9   :  { %v2788_v23 = vpop.f32.mrf.mxu0 }
 0x8da   :  { %2146 = vst [vmem:[%s4047_s6 + $0x90] sm:$0xff] %v2074_v20  ;;  %v2789_v25 = vadd.f32 %v2788_v23, %v2787_v19 }
 0x8db   :  { %v2790_v27 = vpop.f32.mrf.mxu0 }
 0x8dc   :  { %v2077_v29 = vadd.f32 %v2789_v25, %v3911_v52 }
 0x8dd   :  { %v2791_v30 = vpop.f32.mrf.mxu0 }
 0x8de   :  { %2147 = vst [vmem:[%s4047_s6 + $0x98] sm:$0xff] %v2077_v29  ;;  %v2792_v32 = vadd.f32 %v2791_v30, %v2790_v27 }
 0x8df   :  { %v2793_v33 = vpop.f32.mrf.mxu0 }
 0x8e0   :  { %v2082_v36 = vadd.f32 %v2792_v32, %v3911_v52 }
 0x8e1   :  { %v2794_v37 = vpop.f32.mrf.mxu0 }
 0x8e2   :  { %2148 = vst [vmem:[%s4047_s6 + $0xa0] sm:$0xff] %v2082_v36  ;;  %v2795_v40 = vadd.f32 %v2794_v37, %v2793_v33 }
 0x8e3   :  { %v2796_v41 = vpop.f32.mrf.mxu0 }
 0x8e4   :  { %v2085_v2 = vadd.f32 %v2795_v40, %v3911_v52 }
 0x8e5   :  { %v2797_v17 = vpop.f32.mrf.mxu0 }
 0x8e6   :  { %2149 = vst [vmem:[%s4047_s6 + $0xa8] sm:$0xff] %v2085_v2  ;;  %v2798_v26 = vadd.f32 %v2797_v17, %v2796_v41 }
 0x8e7   :  { %v2799_v46 = vpop.f32.mrf.mxu0 }
 0x8e8   :  { %v2090_v48 = vadd.f32 %v2798_v26, %v3911_v52 }
 0x8e9   :  { %v2800_v8 = vpop.f32.mrf.mxu0 }
 0x8ea   :  { %2150 = vst [vmem:[%s4047_s6 + $0xb0] sm:$0xff] %v2090_v48  ;;  %v2801_v11 = vadd.f32 %v2800_v8, %v2799_v46 }
 0x8eb   :  { %v2802_v13 = vpop.f32.mrf.mxu0 }
 0x8ec   :  { %v2093_v38 = vadd.f32 %v2801_v11, %v3911_v52 }
 0x8ed   :  { %v2803_v42 = vpop.f32.mrf.mxu0 }
 0x8ee   :  { %2151 = vst [vmem:[%s4047_s6 + $0xb8] sm:$0xff] %v2093_v38  ;;  %v2804_v49 = vadd.f32 %v2803_v42, %v2802_v13 }
 0x8ef   :  { %v2805_v53 = vpop.f32.mrf.mxu0 }
 0x8f0   :  { %v2098_v50 = vadd.f32 %v2804_v49, %v3911_v52 }
 0x8f1   :  { %v2806_v51 = vpop.f32.mrf.mxu0 }
 0x8f2   :  { %2152 = vst [vmem:[%s4047_s6 + $0xc0] sm:$0xff] %v2098_v50  ;;  %v2807_v54 = vadd.f32 %v2806_v51, %v2805_v53 }
 0x8f3   :  { %v2808_v24 = vpop.f32.mrf.mxu0 }
 0x8f4   :  { %v2101_v56 = vadd.f32 %v2807_v54, %v3911_v52 }
 0x8f5   :  { %v2809_v57 = vpop.f32.mrf.mxu0 }
 0x8f6   :  { %2153 = vst [vmem:[%s4047_s6 + $0xc8] sm:$0xff] %v2101_v56  ;;  %v2810_v58 = vadd.f32 %v2809_v57, %v2808_v24 }
 0x8f7   :  { %v2811_v59 = vpop.f32.mrf.mxu0 }
 0x8f8   :  { %v2106_v60 = vadd.f32 %v2810_v58, %v3911_v52 }
 0x8f9   :  { %v2812_v61 = vpop.f32.mrf.mxu0 }
 0x8fa   :  { %2154 = vst [vmem:[%s4047_s6 + $0xd0] sm:$0xff] %v2106_v60  ;;  %v2813_v62 = vadd.f32 %v2812_v61, %v2811_v59 }
 0x8fb   :  { %v2814_v63 = vpop.f32.mrf.mxu0 }
 0x8fc   :  { %v2109_v0 = vadd.f32 %v2813_v62, %v3911_v52 }
 0x8fd   :  { %v2815_v1 = vpop.f32.mrf.mxu0 }
 0x8fe   :  { %2155 = vst [vmem:[%s4047_s6 + $0xd8] sm:$0xff] %v2109_v0  ;;  %v2816_v3 = vadd.f32 %v2815_v1, %v2814_v63 }
 0x8ff   :  { %v2817_v18 = vpop.f32.mrf.mxu0 }
 0x900   :  { %v2114_v21 = vadd.f32 %v2816_v3, %v3911_v52 }
 0x901   :  { %v2818_v22 = vpop.f32.mrf.mxu0 }
 0x902   :  { %2156 = vst [vmem:[%s4047_s6 + $0xe0] sm:$0xff] %v2114_v21  ;;  %v2819_v44 = vadd.f32 %v2818_v22, %v2817_v18 }
 0x903   :  { %v2820_v34 = vpop.f32.mrf.mxu0 }
 0x904   :  { %v2117_v39 = vadd.f32 %v2819_v44, %v3911_v52 }
 0x905   :  { %v2821_v5 = vpop.f32.mrf.mxu0 }
 0x906   :  { %2157 = vst [vmem:[%s4047_s6 + $0xe8] sm:$0xff] %v2117_v39  ;;  %v2822_v6 = vadd.f32 %v2821_v5, %v2820_v34 }
 0x907   :  { %v2823_v7 = vpop.f32.mrf.mxu0 }
 0x908   :  { %v2122_v10 = vadd.f32 %v2822_v6, %v3911_v52 }
 0x909   :  { %v2824_v31 = vpop.f32.mrf.mxu0 }
 0x90a   :  { %2158 = vst [vmem:[%s4047_s6 + $0xf0] sm:$0xff] %v2122_v10  ;;  %v2825_v35 = vadd.f32 %v2824_v31, %v2823_v7 }
 0x90c   :  { %v2125_v55 = vadd.f32 %v2825_v35, %v3911_v52 }
 0x90e   :  { %2159 = vst [vmem:[%s4047_s6 + $0xf8] sm:$0xff] %v2125_v55 }

</bundles_post_ra>
